<compile_context>
chip_gen: v7x
topology: tpu7x:2x2x1
jax: 0.10.0
libtpu: 0.0.40
codegen_flags: <defaults>
</compile_context>

<pallas_src>
import jax
import jax.numpy as jnp
from jax.experimental import pallas as pl
from jax.experimental.pallas import tpu as pltpu

# ---------------- problem sizes (small, deterministic) ----------------
B = 2          # batch
N = 8          # sequence length
C = 32         # dim
H = 4          # num_heads
DH = C // H    # head_dim = 8
P = 4          # prompt prefix length
G = B * H      # fused batch*heads axis
SCALE = DH ** (-0.5)


# ---------------- Pallas kernel: whole problem in one invocation ----------------
def pret_attention_kernel(x_ref, wqkv_ref, bqkv_ref, kpre_ref, vpre_ref,
                          wproj_ref, bproj_ref, o_ref):
    # x_ref:     (B*N, C)    f32   activations (cast to bf16 on-chip)
    # wqkv_ref:  (C, 3C)     bf16  q columns pre-scaled by head_dim**-0.5
    # bqkv_ref:  (1, 3C)     f32   q part pre-scaled, k part zero
    # kpre_ref:  (G, P, DH)  f32   prompt key prefix, head-major
    # vpre_ref:  (G, P, DH)  f32   prompt value prefix, head-major
    # wproj_ref: (C, C)      bf16
    # bproj_ref: (1, C)      f32
    # o_ref:     (B*N, C)    f32

    # --- fused QKV projection for the whole batch: one MXU pass ---
    x = x_ref[...].astype(jnp.bfloat16)
    qkv = jnp.dot(x, wqkv_ref[...],
                  preferred_element_type=jnp.float32) + bqkv_ref[...]      # (B*N, 3C) f32

    # --- bring heads to the leading (fused B*H) axis, once per tensor ---
    def heads(cols):  # (B*N, C) -> (G, N, DH)
        return cols.reshape(B, N, H, DH).transpose(0, 2, 1, 3).reshape(G, N, DH)

    q = heads(qkv[:, 0 * C:1 * C])          # already scaled via the folded weights
    k = heads(qkv[:, 1 * C:2 * C])
    v = heads(qkv[:, 2 * C:3 * C])
    kp = kpre_ref[...]                      # (G, P, DH)
    vp = vpre_ref[...]                      # (G, P, DH)

    # --- scores against [prompt-prefix | local] keys, all f32, one batched
    #     einsum per block (no per-batch / per-head Python loops) ---
    s_pre = jnp.einsum('gnd,gpd->gnp', q, kp,
                       preferred_element_type=jnp.float32)                 # (G, N, P)
    s_loc = jnp.einsum('gnd,gmd->gnm', q, k,
                       preferred_element_type=jnp.float32)                 # (G, N, N)

    # Softmax over the virtual concatenation [prefix | local]: shared max and
    # shared denominator (identical to softmax over the concatenated keys).
    m = jnp.maximum(jnp.max(s_pre, axis=-1, keepdims=True),
                    jnp.max(s_loc, axis=-1, keepdims=True))                # (G, N, 1)
    e_pre = jnp.exp(s_pre - m)
    e_loc = jnp.exp(s_loc - m)
    inv = pl.reciprocal(jnp.sum(e_pre, axis=-1, keepdims=True)
                        + jnp.sum(e_loc, axis=-1, keepdims=True),
                        approx=True)                                       # EUP slot
    a_pre = e_pre * inv                                                    # f32 probs
    a_loc = e_loc * inv

    # --- attn @ v, f32 probabilities / f32 accumulation ---
    o = (jnp.einsum('gnp,gpd->gnd', a_pre, vp,
                    preferred_element_type=jnp.float32)
         + jnp.einsum('gnm,gmd->gnd', a_loc, v,
                      preferred_element_type=jnp.float32))                 # (G, N, DH)

    # back to token-major (B*N, C) and one MXU pass for the output projection;
    # single lane-contiguous store of the result slab.
    out = o.reshape(B, H, N, DH).transpose(0, 2, 1, 3).reshape(B * N, C)
    y = jnp.dot(out.astype(jnp.bfloat16), wproj_ref[...],
                preferred_element_type=jnp.float32) + bproj_ref[...]
    o_ref[...] = y.astype(o_ref.dtype)


# ---------------- one-time parameter preparation (outside the call path) ----------------
def prepare_params(wqkv, q_bias, v_bias, wproj, bproj, prompt):
    """Transpose weights to x@W layout, fold the softmax scale into the q
    projection, cast matmul weights to bf16, and split the prompt into
    head-major key/value prefixes.  Done ONCE, so the per-call path has no
    cast/transpose HLOs."""
    wqkv_t = jnp.asarray(wqkv, jnp.float32).T                              # (C, 3C)
    col_scale = jnp.concatenate([jnp.full((C,), SCALE, jnp.float32),
                                 jnp.ones((2 * C,), jnp.float32)])
    wqkv_t = (wqkv_t * col_scale[None, :]).astype(jnp.bfloat16)
    qkv_bias = jnp.concatenate([q_bias * SCALE,
                                jnp.zeros_like(v_bias),                    # k bias = 0
                                v_bias]).reshape(1, 3 * C).astype(jnp.float32)
    wproj_t = jnp.asarray(wproj, jnp.float32).T.astype(jnp.bfloat16)       # (C, C)
    bproj2 = jnp.asarray(bproj, jnp.float32).reshape(1, C)
    # prompt: (B, 2, P, H, DH) -> permute(1, 0, 3, 2, 4) as in the module
    pr = jnp.transpose(prompt, (1, 0, 3, 2, 4)).astype(jnp.float32)        # (2, B, H, P, DH)
    key_prefix = pr[0].reshape(G, P, DH)                                   # head-major
    value_prefix = pr[1].reshape(G, P, DH)
    return (wqkv_t, qkv_bias, key_prefix, value_prefix, wproj_t, bproj2)


@jax.jit
def pret_attention(x, wqkv_t, qkv_bias, key_prefix, value_prefix, wproj_t, bproj):
    """x: (B, N, C) f32; returns (B, N, C) f32."""
    out = pl.pallas_call(
        pret_attention_kernel,
        out_shape=jax.ShapeDtypeStruct((B * N, C), jnp.float32),
        # No grid: all operands (a few KB) are whole-array resident in VMEM for
        # a single invocation -> no per-step pipeline overhead, no
        # double-buffered weights.  (v7x could add grid=(B,), "parallel".)
        in_specs=[pl.BlockSpec(memory_space=pltpu.MemorySpace.VMEM)] * 7,
        out_specs=pl.BlockSpec(memory_space=pltpu.MemorySpace.VMEM),
    )(x.reshape(B * N, C), wqkv_t, qkv_bias, key_prefix, value_prefix,
      wproj_t, bproj)
    return out.reshape(B, N, C)


# ---------------- pure-JAX reference (mirrors the PyTorch forward, f32) ----------------
def reference_forward(x, wqkv, qkv_bias, prompt, wproj, bproj):
    Bb, Nn, Cc = x.shape
    qkv = x @ wqkv.T + qkv_bias                                            # (B, N, 3C)
    qkv = qkv.reshape(Bb, Nn, 3, H, DH).transpose(2, 0, 3, 1, 4)           # (3, B, H, N, DH)
    q, k, v = qkv[0], qkv[1], qkv[2]
    q = q * SCALE
    pr = jnp.transpose(prompt, (1, 0, 3, 2, 4))                            # (2, B, H, P, DH)
    key_prefix, value_prefix = pr[0], pr[1]
    k = jnp.concatenate([key_prefix, k], axis=2)                           # (B, H, P+N, DH)
    v = jnp.concatenate([value_prefix, v], axis=2)
    attn = q @ jnp.swapaxes(k, -2, -1)                                     # (B, H, N, P+N)
    attn = jax.nn.softmax(attn, axis=-1)
    out = jnp.swapaxes(attn @ v, 1, 2).reshape(Bb, Nn, -1)                 # (B, N, C)
    return out @ wproj.T + bproj


if __name__ == "__main__":
    key = jax.random.PRNGKey(0)
    k_x, k_wqkv, k_qb, k_vb, k_wp, k_bp, k_prompt = jax.random.split(key, 7)

    # inputs
    x = jax.random.normal(k_x, (B, N, C), dtype=jnp.float32)
    # prompt as the PyTorch module expects: (B, 2, P, num_heads, head_dim)
    prompt = jax.random.normal(k_prompt, (B, 2, P, H, DH), dtype=jnp.float32) * 0.5

    # parameters (deterministic init; module's __init__ gives the shapes, torch (out, in))
    wqkv = jax.random.normal(k_wqkv, (3 * C, C), dtype=jnp.float32) * 0.02
    q_bias = jax.random.normal(k_qb, (C,), dtype=jnp.float32) * 0.02
    v_bias = jax.random.normal(k_vb, (C,), dtype=jnp.float32) * 0.02
    wproj = jax.random.normal(k_wp, (C, C), dtype=jnp.float32) * 0.02
    bproj = jax.random.normal(k_bp, (C,), dtype=jnp.float32) * 0.02

    # one-time prep (bf16 weights, scale fold, head-major prefixes)
    params = prepare_params(wqkv, q_bias, v_bias, wproj, bproj, prompt)

    out = pret_attention(x, *params)
    out = jax.block_until_ready(out)

    qkv_bias_f32 = jnp.concatenate([q_bias, jnp.zeros_like(v_bias), v_bias])
    ref = reference_forward(x, wqkv, qkv_bias_f32, prompt, wproj, bproj)

    assert out.shape == (B, N, C)
    err = jnp.max(jnp.abs(out - ref))
    # bf16 projection weights + approx reciprocal => small deviation vs f32 reference.
    assert jnp.allclose(out, ref, atol=1e-2, rtol=1e-2), f"max abs err = {err}"

    # TODO(synk): window_size relative-position-bias table and the rel_pos_bias input
    # are not exercised (module default window_size=None, rel_pos_bias=None); dropout
    # is identity (p=0, eval mode).
    print("KERNEL_OK")
</pallas_src>

<mosaic_0001>
module attributes {stable_mosaic.version = 11 : i64} {
  func.func @pret_attention_kernel(%arg0: memref<16x32xf32, #tpu.memory_space<vmem>>, %arg1: memref<32x96xbf16, #tpu.memory_space<vmem>>, %arg2: memref<1x96xf32, #tpu.memory_space<vmem>>, %arg3: memref<8x4x8xf32, #tpu.memory_space<vmem>>, %arg4: memref<8x4x8xf32, #tpu.memory_space<vmem>>, %arg5: memref<32x32xbf16, #tpu.memory_space<vmem>>, %arg6: memref<1x32xf32, #tpu.memory_space<vmem>>, %arg7: memref<16x32xf32, #tpu.memory_space<vmem>>) attributes {dimension_semantics = [], scalar_prefetch = 0 : i64, scratch_operands = 0 : i64, tpu.core_type = #tpu.core_type<tc>} {
    %c0 = arith.constant 0 : index
    %c0_0 = arith.constant 0 : index
    %0 = vector.load %arg0[%c0, %c0_0] : memref<16x32xf32, #tpu.memory_space<vmem>>, vector<16x32xf32>
    %1 = arith.truncf %0 : vector<16x32xf32> to vector<16x32xbf16>
    %c0_1 = arith.constant 0 : index
    %c0_2 = arith.constant 0 : index
    %2 = vector.load %arg1[%c0_1, %c0_2] : memref<32x96xbf16, #tpu.memory_space<vmem>>, vector<32x96xbf16>
    %cst = arith.constant dense<0.000000e+00> : vector<16x96xf32>
    %3 = tpu.matmul %1, %2, %cst {dimension_numbers = #tpu.dot_dimension_numbers<[1], [0], [0], [1], [0, 0, 1, 1], [], []>} : vector<16x32xbf16>, vector<32x96xbf16>, vector<16x96xf32> -> vector<16x96xf32>
    %c0_3 = arith.constant 0 : index
    %c0_4 = arith.constant 0 : index
    %4 = vector.load %arg2[%c0_3, %c0_4] : memref<1x96xf32, #tpu.memory_space<vmem>>, vector<1x96xf32>
    %5 = vector.broadcast %4 : vector<1x96xf32> to vector<16x96xf32>
    %6 = arith.addf %3, %5 : vector<16x96xf32>
    %7 = vector.extract_strided_slice %6 {offsets = [0, 0], sizes = [16, 32], strides = [1, 1]} : vector<16x96xf32> to vector<16x32xf32>
    %8 = vector.shape_cast %7 : vector<16x32xf32> to vector<2x8x4x8xf32>
    %9 = tpu.transpose %8, [0, 2, 1, 3] : vector<2x8x4x8xf32> -> vector<2x4x8x8xf32>
    %10 = vector.shape_cast %9 : vector<2x4x8x8xf32> to vector<8x8x8xf32>
    %11 = vector.extract_strided_slice %6 {offsets = [0, 32], sizes = [16, 32], strides = [1, 1]} : vector<16x96xf32> to vector<16x32xf32>
    %12 = vector.shape_cast %11 : vector<16x32xf32> to vector<2x8x4x8xf32>
    %13 = tpu.transpose %12, [0, 2, 1, 3] : vector<2x8x4x8xf32> -> vector<2x4x8x8xf32>
    %14 = vector.shape_cast %13 : vector<2x4x8x8xf32> to vector<8x8x8xf32>
    %15 = vector.extract_strided_slice %6 {offsets = [0, 64], sizes = [16, 32], strides = [1, 1]} : vector<16x96xf32> to vector<16x32xf32>
    %16 = vector.shape_cast %15 : vector<16x32xf32> to vector<2x8x4x8xf32>
    %17 = tpu.transpose %16, [0, 2, 1, 3] : vector<2x8x4x8xf32> -> vector<2x4x8x8xf32>
    %18 = vector.shape_cast %17 : vector<2x4x8x8xf32> to vector<8x8x8xf32>
    %c0_5 = arith.constant 0 : index
    %c0_6 = arith.constant 0 : index
    %c0_7 = arith.constant 0 : index
    %19 = vector.load %arg3[%c0_5, %c0_6, %c0_7] : memref<8x4x8xf32, #tpu.memory_space<vmem>>, vector<8x4x8xf32>
    %c0_8 = arith.constant 0 : index
    %c0_9 = arith.constant 0 : index
    %c0_10 = arith.constant 0 : index
    %20 = vector.load %arg4[%c0_8, %c0_9, %c0_10] : memref<8x4x8xf32, #tpu.memory_space<vmem>>, vector<8x4x8xf32>
    "tpu.trace_start"() <{level = 10 : i32, message = "gnd,gpd->gnp"}> : () -> ()
    %cst_11 = arith.constant dense<0.000000e+00> : vector<8x8x4xf32>
    %21 = tpu.matmul %10, %19, %cst_11 {dimension_numbers = #tpu.dot_dimension_numbers<[2], [2], [1], [1], [0, 0, 0, 1, 1, 1], [0], [0]>} : vector<8x8x8xf32>, vector<8x4x8xf32>, vector<8x8x4xf32> -> vector<8x8x4xf32>
    "tpu.trace_stop"() : () -> ()
    "tpu.trace_start"() <{level = 10 : i32, message = "gnd,gmd->gnm"}> : () -> ()
    %cst_12 = arith.constant dense<0.000000e+00> : vector<8x8x8xf32>
    %22 = tpu.matmul %10, %14, %cst_12 {dimension_numbers = #tpu.dot_dimension_numbers<[2], [2], [1], [1], [0, 0, 0, 1, 1, 1], [0], [0]>} : vector<8x8x8xf32>, vector<8x8x8xf32>, vector<8x8x8xf32> -> vector<8x8x8xf32>
    "tpu.trace_stop"() : () -> ()
    %cst_13 = arith.constant dense<0xFF800000> : vector<8x8xf32>
    %23 = vector.multi_reduction <maximumf>, %21, %cst_13 [2] : vector<8x8x4xf32> to vector<8x8xf32>
    %24 = vector.shape_cast %23 : vector<8x8xf32> to vector<8x8x1xf32>
    %cst_14 = arith.constant dense<0xFF800000> : vector<8x8xf32>
    %25 = vector.multi_reduction <maximumf>, %22, %cst_14 [2] : vector<8x8x8xf32> to vector<8x8xf32>
    %26 = vector.shape_cast %25 : vector<8x8xf32> to vector<8x8x1xf32>
    %27 = arith.maximumf %24, %26 : vector<8x8x1xf32>
    %28 = vector.broadcast %27 : vector<8x8x1xf32> to vector<8x8x4xf32>
    %29 = arith.subf %21, %28 : vector<8x8x4xf32>
    %30 = math.exp %29 : vector<8x8x4xf32>
    %31 = vector.broadcast %27 : vector<8x8x1xf32> to vector<8x8x8xf32>
    %32 = arith.subf %22, %31 : vector<8x8x8xf32>
    %33 = math.exp %32 : vector<8x8x8xf32>
    %cst_15 = arith.constant dense<0.000000e+00> : vector<8x8xf32>
    %34 = vector.multi_reduction <add>, %30, %cst_15 [2] : vector<8x8x4xf32> to vector<8x8xf32>
    %35 = vector.shape_cast %34 : vector<8x8xf32> to vector<8x8x1xf32>
    %cst_16 = arith.constant dense<0.000000e+00> : vector<8x8xf32>
    %36 = vector.multi_reduction <add>, %33, %cst_16 [2] : vector<8x8x8xf32> to vector<8x8xf32>
    %37 = vector.shape_cast %36 : vector<8x8xf32> to vector<8x8x1xf32>
    %38 = arith.addf %35, %37 : vector<8x8x1xf32>
    %39 = tpu.reciprocal %38 {approx = true} : vector<8x8x1xf32> -> vector<8x8x1xf32>
    %40 = vector.broadcast %39 : vector<8x8x1xf32> to vector<8x8x4xf32>
    %41 = arith.mulf %30, %40 : vector<8x8x4xf32>
    %42 = vector.broadcast %39 : vector<8x8x1xf32> to vector<8x8x8xf32>
    %43 = arith.mulf %33, %42 : vector<8x8x8xf32>
    "tpu.trace_start"() <{level = 10 : i32, message = "gnp,gpd->gnd"}> : () -> ()
    %cst_17 = arith.constant dense<0.000000e+00> : vector<8x8x8xf32>
    %44 = tpu.matmul %41, %20, %cst_17 {dimension_numbers = #tpu.dot_dimension_numbers<[2], [1], [1], [2], [0, 0, 0, 1, 1, 2], [0], [0]>} : vector<8x8x4xf32>, vector<8x4x8xf32>, vector<8x8x8xf32> -> vector<8x8x8xf32>
    "tpu.trace_stop"() : () -> ()
    "tpu.trace_start"() <{level = 10 : i32, message = "gnm,gmd->gnd"}> : () -> ()
    %cst_18 = arith.constant dense<0.000000e+00> : vector<8x8x8xf32>
    %45 = tpu.matmul %43, %18, %cst_18 {dimension_numbers = #tpu.dot_dimension_numbers<[2], [1], [1], [2], [0, 0, 0, 1, 1, 2], [0], [0]>} : vector<8x8x8xf32>, vector<8x8x8xf32>, vector<8x8x8xf32> -> vector<8x8x8xf32>
    "tpu.trace_stop"() : () -> ()
    %46 = arith.addf %44, %45 : vector<8x8x8xf32>
    %47 = vector.shape_cast %46 : vector<8x8x8xf32> to vector<2x4x8x8xf32>
    %48 = tpu.transpose %47, [0, 2, 1, 3] : vector<2x4x8x8xf32> -> vector<2x8x4x8xf32>
    %49 = vector.shape_cast %48 : vector<2x8x4x8xf32> to vector<16x32xf32>
    %50 = arith.truncf %49 : vector<16x32xf32> to vector<16x32xbf16>
    %c0_19 = arith.constant 0 : index
    %c0_20 = arith.constant 0 : index
    %51 = vector.load %arg5[%c0_19, %c0_20] : memref<32x32xbf16, #tpu.memory_space<vmem>>, vector<32x32xbf16>
    %cst_21 = arith.constant dense<0.000000e+00> : vector<16x32xf32>
    %52 = tpu.matmul %50, %51, %cst_21 {dimension_numbers = #tpu.dot_dimension_numbers<[1], [0], [0], [1], [0, 0, 1, 1], [], []>} : vector<16x32xbf16>, vector<32x32xbf16>, vector<16x32xf32> -> vector<16x32xf32>
    %c0_22 = arith.constant 0 : index
    %c0_23 = arith.constant 0 : index
    %53 = vector.load %arg6[%c0_22, %c0_23] : memref<1x32xf32, #tpu.memory_space<vmem>>, vector<1x32xf32>
    %54 = vector.broadcast %53 : vector<1x32xf32> to vector<16x32xf32>
    %55 = arith.addf %52, %54 : vector<16x32xf32>
    %c0_24 = arith.constant 0 : index
    %c0_25 = arith.constant 0 : index
    %56 = vector.load %arg7[%c0_24, %c0_25] : memref<16x32xf32, #tpu.memory_space<vmem>>, vector<16x32xf32>
    tpu.vector_store %arg7[%c0_24, %c0_25], %55 {strides = array<i32>} : memref<16x32xf32, #tpu.memory_space<vmem>>, vector<16x32xf32>,
    return
  }
}

</mosaic_0001>

<bundles_post_ra>
// kernel: pret_attention.1
= control target key start
LH: loop header
LB: loop body
LE: loop exit
PB: predicated region body
PF: predicated region fallthrough
CT: control target
= control target key end

     0   :  { %12 = vsyncpa [#allocation3], 0  ;;  %s5318_s0 = inlined_call_operand.hbm [shape: f32[16,32], index: 0, kind: input, shape index: {}]   ;;  %s5319_s1 = inlined_call_operand.hbm [shape: bf16[32,96], index: 1, kind: input, shape index: {}]   ;;  %s5320_s2 = inlined_call_operand.vmem [shape: f32[1,96], index: 2, kind: input, shape index: {}]   ;;  %s5321_s3 = inlined_call_operand.hbm [shape: f32[8,4,8], index: 3, kind: input, shape index: {}]   ;;  %s5322_s4 = inlined_call_operand.hbm [shape: f32[8,4,8], index: 4, kind: input, shape index: {}]   ;;  %s5323_s5 = inlined_call_operand.vmem [shape: bf16[32,32], index: 5, kind: input, shape index: {}]   ;;  %s5324_s6 = inlined_call_operand.vmem [shape: f32[1,32], index: 6, kind: input, shape index: {}]   ;;  %s5325_s7 = inlined_call_operand.hbm [shape: f32[16,32], index: 7, kind: output, shape index: {}]  }
   0x1   :  { %13 = vsyncpa [#allocation6], 0 }
   0x2   :  { %14 = vsyncpa [#allocation9], 0 }
   0x3   :  { %15 = vsyncpa [#allocation4], 0  ;;  %s4564_s24 = smov [#allocation5]   ;;  %s4446_s28 = scalar_lea.hbm %s5319_s1, 256 }
   0x4   :  { %s33_s25 = sshll.u32 %s4564_s24, 4  ;;  %p4447_p0 = scmp.ne.s32.totalorder %s5319_s1, %s4446_s28  ;;  %s34_s25 = int_to_ptr.vmem [resolvable:$true] %s33_s25 }
   0x5   :  { %p4450_p1 = scmp.lt.u32.totalorder %s4446_s28, %s5319_s1 }
   0x7   :  { %p4452_p2 = pnand %p4450_p1, %p4447_p0 }
   0x9   :  { %4455 = shalt.err (!%p4452_p2)
}
   0xa   :  { %s4456_s10 = scalar_lea.vmem %s34_s25, 256  ;;  %p4461_p4 = scmp.lt.s32.totalorder %s34_s25, %s34_s25 }
   0xb   :  { %p4457_p3 = scmp.ne.s32.totalorder %s34_s25, %s4456_s10  ;;  %p4462_p5 = scmp.lt.s32.totalorder %s4456_s10, %s4456_s10 }
   0xd   :  { %p4463_p6 = por %p4462_p5, %p4461_p4 }
   0xf   :  { %p4464_p7 = pnand %p4463_p6, %p4457_p3 }
  0x11   :  { %4467 = shalt.err (!%p4464_p7)
}
  0x12   :  { %s4565_s11 = smov 64   ;;  %s4566_s12 = smov 4  }
  0x13   :  { %39 = dma.hbm_to_vmem [thread:$0]  %s5319_s1, 256, %s34_s25, [#allocation6], %s4565_s11, %s4565_s11, %s4566_s12  }
  0x14   :  { %s4567_s15 = smov [#allocation2]   ;;  %s4468_s19 = scalar_lea.hbm %s5318_s0, 256 }
  0x15   :  { %s21_s16 = sshll.u32 %s4567_s15, 4  ;;  %p4469_p8 = scmp.ne.s32.totalorder %s5318_s0, %s4468_s19  ;;  %s22_s16 = int_to_ptr.vmem [resolvable:$true] %s21_s16 }
  0x16   :  { %p4472_p9 = scmp.lt.u32.totalorder %s4468_s19, %s5318_s0 }
  0x18   :  { %p4474_p10 = pnand %p4472_p9, %p4469_p8 }
  0x1a   :  { %4477 = shalt.err (!%p4474_p10)
}
  0x1b   :  { %s4478_s24 = scalar_lea.vmem %s22_s16, 256  ;;  %p4483_p12 = scmp.lt.s32.totalorder %s22_s16, %s22_s16 }
  0x1c   :  { %p4479_p11 = scmp.ne.s32.totalorder %s22_s16, %s4478_s24  ;;  %p4484_p13 = scmp.lt.s32.totalorder %s4478_s24, %s4478_s24 }
  0x1e   :  { %p4485_p0 = por %p4484_p13, %p4483_p12 }
  0x20   :  { %p4486_p1 = pnand %p4485_p0, %p4479_p11 }
  0x22   :  { %4489 = shalt.err (!%p4486_p1)
}
  0x23   :  { %s4568_s1 = smov 128   ;;  %s4569_s25 = smov 8  }
  0x24   :  { %27 = dma.hbm_to_vmem [thread:$0]  %s5318_s0, 256, %s22_s16, [#allocation3], %s4568_s1, %s4568_s1, %s4569_s25  }
  0x25   :  { %s4570_s28 = smov [#allocation7]   ;;  %s4571_s30 = smov [#allocation8]  }
  0x26   :  { %s47_s29 = sshll.u32 %s4570_s28, 4  ;;  %s59_s8 = sshll.u32 %s4571_s30, 4  ;;  %s48_s29 = int_to_ptr.vmem [resolvable:$true] %s47_s29  ;;  %s4653_s8 = int_to_ptr.vmem [resolvable:$true] %s59_s8 }
  0x27   :  { %s4490_s13 = scalar_lea.hbm %s5321_s3, 512 }
  0x28   :  { %p4491_p2 = scmp.ne.s32.totalorder %s5321_s3, %s4490_s13  ;;  %p4494_p3 = scmp.lt.u32.totalorder %s4490_s13, %s5321_s3 }
  0x2a   :  { %p4496_p4 = pnand %p4494_p3, %p4491_p2 }
  0x2c   :  { %4499 = shalt.err (!%p4496_p4)
}
  0x2d   :  { %s4500_s0 = scalar_lea.vmem %s48_s29, 512  ;;  %p4505_p6 = scmp.lt.s32.totalorder %s48_s29, %s48_s29 }
  0x2e   :  { %p4501_p5 = scmp.ne.s32.totalorder %s48_s29, %s4500_s0  ;;  %p4506_p7 = scmp.lt.s32.totalorder %s4500_s0, %s4500_s0 }
  0x30   :  { %p4507_p8 = por %p4506_p7, %p4505_p6 }
  0x32   :  { %p4508_p9 = pnand %p4507_p8, %p4501_p5 }
  0x34   :  { %4511 = shalt.err (!%p4508_p9)
}
  0x35   :  { %53 = dma.hbm_to_vmem [thread:$0]  %s5321_s3, 512, %s48_s29, [#allocation6], %s4565_s11, %s4565_s11, %s4566_s12  }
  0x36   :  { %s4512_s22 = scalar_lea.hbm %s5322_s4, 512 }
  0x37   :  { %p4513_p10 = scmp.ne.s32.totalorder %s5322_s4, %s4512_s22  ;;  %p4516_p11 = scmp.lt.u32.totalorder %s4512_s22, %s5322_s4 }
  0x39   :  { %p4518_p12 = pnand %p4516_p11, %p4513_p10 }
  0x3b   :  { %4521 = shalt.err (!%p4518_p12)
}
  0x3c   :  { %s4522_s28 = scalar_lea.vmem %s4653_s8, 512  ;;  %p4527_p0 = scmp.lt.s32.totalorder %s4653_s8, %s4653_s8 }
  0x3d   :  { %p4523_p13 = scmp.ne.s32.totalorder %s4653_s8, %s4522_s28  ;;  %p4528_p1 = scmp.lt.s32.totalorder %s4522_s28, %s4522_s28 }
  0x3f   :  { %p4529_p2 = por %p4528_p1, %p4527_p0 }
  0x41   :  { %p4530_p3 = pnand %p4529_p2, %p4523_p13 }
  0x43   :  { %4533 = shalt.err (!%p4530_p3)
}
  0x44   :  { %65 = dma.hbm_to_vmem [thread:$0]  %s5322_s4, 512, %s4653_s8, [#allocation9], %s4565_s11, %s4565_s11, %s4566_s12  }
  0x45   :  { %4556 = dma.done.wait [#allocation3], 256  }
  0x46   :  { %4557 = vsyncadd [#allocation3], 4294967040 }
  0x47   :  { %4558 = dma.done.wait [#allocation6], 768  }
  0x48   :  { %4559 = vsyncadd [#allocation6], 4294966528 }
  0x49   :  { %4560 = dma.done.wait [#allocation9], 512  }
  0x4a   :  { %4561 = vsyncadd [#allocation9], 4294966784  ;;  %v4572_v0 = vmov 0.0   ;;  %vm4573_vm0 = vmmov 0   ;;  %v4394_v1 = vld [vmem:[#allocation5] sm:$0xff]   ;;  %v4395_v2 = vld [vmem:[#allocation5 + $0x8] sm:$0xff]   ;;  %v179_v17 = vlaneseq }
  0x4b   :  { %4168 = vmatprep.subr.bf16.mxu0 %v4572_v0  ;;  %4172 = vmatprep.mubr.msk.bf16.mxu0 %vm4573_vm0, %v4572_v0  ;;  %v83_v3 = vld [vmem:[#allocation2] sm:$0xff]  ;;  %v84_v4 = vld [vmem:[#allocation2 + $0x8] sm:$0xff]  ;;  %vm109_vm1 = vcmask 261120   ;;  %s4574_s30 = smov 104   ;;  %s4575_s8 = smov 120   ;;  %vm1054_vm2 = vcmask 64512  }
  0x4c   :  { %4181 = vmatprep.subr.mxu1 %v4572_v0  ;;  %4183 = vmatprep.mubr.msk.f32.mxu1 %vm4573_vm0, %v4572_v0  ;;  %v85_v5 = vpack.c.bf16 %v84_v4, %v83_v3  ;;  %v4018_v6 = vld [vmem:[%s5320_s2] ss:$0 sm:$0xff]  ;;  %s4576_s9 = smov 112   ;;  %v1039_v14 = vld [vmem:[#allocation7 + $0x4] sm:$0xf]  ;;  %s4577_s2 = smov 96  }
  0x4d   :  { %4169 = vmatpush3.bf16.msra.mxu0 %v4394_v1  ;;  %v1038_v13 = vld [vmem:[#allocation7] sm:$0xf]  ;;  %4182 = vmatpush3.xpose.msk.msra.mxu1 %vm1054_vm2, %v1039_v14  ;;  %v4578_v15 = vmov 1983009808   ;;  %v4579_v18 = vmov 1934713408  }
  0x4e   :  { %4170 = vmatprep.subr.bf16.mxu0 %v4572_v0  ;;  %4186 = vmatprep.subr.mxu1 %v4572_v0  ;;  %v177_v16 = vunpack.c.l.s4 %v4578_v15  ;;  %v209_v19 = vunpack.c.l.s4 %v4579_v18  ;;  %v180_v21 = vshrl.u32 %v179_v17, 7  ;;  %vm2247_vm3 = vcmask 31744   ;;  %s4581_s15 = smov 24   ;;  %s4582_s0 = smov [#allocation10]  }
  0x4f   :  { %vm3019_vm4 = vcmask 1043456   ;;  %vm3923_vm5 = vcmask 130048   ;;  %vm3926_vm6 = vcmask 195584   ;;  %s4004_s16 = sshll.u32 %s4582_s0, 4  ;;  %s4005_s16 = int_to_ptr.vmem [resolvable:$true] %s4004_s16 }
  0x50   :  { %v178_v20 = vunpack.c.0.s8 %v177_v16  ;;  %v210_v24 = vunpack.c.0.s8 %v209_v19  ;;  %s4534_s19 = scalar_lea.vmem %s4005_s16, 256  ;;  %p4539_p5 = scmp.lt.s32.totalorder %s4005_s16, %s4005_s16 }
  0x51   :  { %4171 = vmatpush3.bf16.msra.mxu0 %v4395_v2  ;;  %p4535_p4 = scmp.ne.s32.totalorder %s4005_s16, %s4534_s19  ;;  %p4540_p6 = scmp.lt.s32.totalorder %s4534_s19, %s4534_s19 }
  0x52   :  { %4176 = vmatprep.subr.mxu0 %v4572_v0  ;;  %v4726_v25 = vsub.s32 %v178_v20, %v180_v21  ;;  %v4744_v32 = vsub.s32 %v210_v24, %v180_v21 }
  0x53   :  { %p4541_p7 = por %p4540_p6, %p4539_p5 }
  0x54   :  { %4173 = vmatmul.mubr.msk.bf16.vlgmr.msra.gmra.mrb[0].mxu0 %vm109_vm1, %v85_v5 }
  0x55   :  { %4178 = vmatprep.mubr.msk.f32.mxu0 %vm4573_vm0, %v4572_v0  ;;  %p4542_p8 = pnand %p4541_p7, %p4535_p4 }
  0x5a   :  { %4177 = vmatpush3.xpose.msk.msra.mxu0 %vm1054_vm2, %v1038_v13 }
  0x5b   :  { %4191 = vmatprep.subr.mxu0 %v4572_v0 }
 0x127   :  { %v147_v7 = vpop.f32.mrb[0].mxu0 }
 0x128   :  { %v4704_v8 = vadd.f32 %v4018_v6, %v147_v7  ;;  %v4174_v9 = vpop.f32.mrb[1].mxu0 }
 0x129   :  { %v150_v10 = vpop.f32.mrb[2].mxu0 }
 0x12a   :  { %168 = vrot.lane.b32.xlu1 %v4704_v8, %s4574_s30  ;;  %156 = vrot.lane.b32.xlu0 %v4704_v8, %s4575_s8  ;;  %v4175_v11 = vpop.f32.mrb[3].mxu0  ;;  %v4708_v12 = vadd.f32 %v4018_v6, %v150_v10 }
 0x12e   :  { %162 = vrot.lane.b32.xlu0 %v4704_v8, %s4576_s9  ;;  %158 = vrot.lane.b32.xlu1 %v4708_v12, %s4575_s8 }
 0x132   :  { %164 = vrot.lane.b32.xlu0 %v4708_v12, %s4576_s9  ;;  %170 = vrot.lane.b32.xlu1 %v4708_v12, %s4574_s30 }
 0x136   :  { %446 = vrot.lane.b32.xlu0 %v4704_v8, %s4577_s2 }
 0x19c   :  { %v4720_v22 = vpop.permute.xlu1 %168  ;;  %v4722_v23 = vpop.permute.xlu0 %156 }
 0x19d   :  { %450 = vrot.lane.b32.xlu1 %v4722_v23, %s4577_s2  ;;  %v190_v26 = vcombine.low %v4722_v23, %v4720_v22  ;;  %v191_v27 = vcombine.high %v4722_v23, %v4720_v22 }
 0x19f   :  { %v198_v33 = vrot.slane %v190_v26, %v4726_v25  ;;  %v205_v34 = vrot.slane %v191_v27, %v4726_v25 }
 0x1a0   :  { %v4732_v28 = vpop.permute.xlu0 %162  ;;  %v4734_v29 = vpop.permute.xlu1 %158 }
 0x1a1   :  { %v174_v30 = vcombine.low %v4704_v8, %v4732_v28  ;;  %v175_v31 = vcombine.high %v4704_v8, %v4732_v28  ;;  %454 = vrot.lane.b32.xlu0 %v4732_v28, %s4577_s2  ;;  %458 = vrot.lane.b32.xlu1 %v4720_v22, %s4577_s2 }
 0x1a3   :  { %v182_v35 = vrot.slane %v174_v30, %v4726_v25  ;;  %v189_v36 = vrot.slane %v175_v31, %v4726_v25 }
 0x1a4   :  { %v4750_v37 = vpop.permute.xlu0 %164  ;;  %v4752_v38 = vpop.permute.xlu1 %170 }
 0x1a5   :  { %v206_v39 = vcombine.low %v182_v35, %v198_v33  ;;  %v207_v40 = vcombine.high %v182_v35, %v198_v33  ;;  %v222_v41 = vcombine.low %v189_v36, %v205_v34  ;;  %v223_v42 = vcombine.high %v189_v36, %v205_v34  ;;  %448 = vrot.lane.b32.xlu0 %v4708_v12, %s4577_s2  ;;  %v1041_v34 = vld [vmem:[#allocation7 + $0xc] sm:$0xf] }
 0x1a6   :  { %v242_v43 = vcombine.low %v4708_v12, %v4750_v37  ;;  %v243_v44 = vcombine.high %v4708_v12, %v4750_v37  ;;  %v258_v45 = vcombine.low %v4734_v29, %v4752_v38  ;;  %v259_v46 = vcombine.high %v4734_v29, %v4752_v38  ;;  %452 = vrot.lane.b32.xlu1 %v4734_v29, %s4577_s2 }
 0x1a7   :  { %v214_v47 = vrot.slane %v206_v39, %v4744_v32  ;;  %v221_v48 = vrot.slane %v207_v40, %v4744_v32  ;;  %v230_v49 = vrot.slane %v222_v41, %v4744_v32  ;;  %v237_v50 = vrot.slane %v223_v42, %v4744_v32  ;;  %v1042_v42 = vld [vmem:[#allocation7 + $0x10] sm:$0xf] }
 0x1a8   :  { %v250_v51 = vrot.slane %v242_v43, %v4726_v25  ;;  %v257_v52 = vrot.slane %v243_v44, %v4726_v25  ;;  %v266_v53 = vrot.slane %v258_v45, %v4726_v25  ;;  %v273_v54 = vrot.slane %v259_v46, %v4726_v25  ;;  %v1043_v43 = vld [vmem:[#allocation7 + $0x14] sm:$0xf] }
 0x1a9   :  { %v310_v55 = vcombine.low %v214_v47, %v221_v48  ;;  %v4022_v56 = vcombine.high %v214_v47, %v221_v48  ;;  %v326_v57 = vcombine.low %v230_v49, %v237_v50  ;;  %v4023_v58 = vcombine.high %v230_v49, %v237_v50  ;;  %456 = vrot.lane.b32.xlu0 %v4750_v37, %s4577_s2  ;;  %v1044_v50 = vld [vmem:[#allocation7 + $0x18] sm:$0xf] }
 0x1aa   :  { %v274_v59 = vcombine.low %v250_v51, %v266_v53  ;;  %v275_v60 = vcombine.high %v250_v51, %v266_v53  ;;  %v290_v61 = vcombine.low %v257_v52, %v273_v54  ;;  %v291_v62 = vcombine.high %v257_v52, %v273_v54  ;;  %460 = vrot.lane.b32.xlu1 %v4752_v38, %s4577_s2  ;;  %v1045_v51 = vld [vmem:[#allocation7 + $0x1c] sm:$0xf] }
 0x1ab   :  { %v317_v63 = vrot.slane %v310_v55, %v4726_v25  ;;  %v325_v1 = vrot.slane %v4022_v56, %v4726_v25  ;;  %v333_v2 = vrot.slane %v326_v57, %v4726_v25  ;;  %v341_v3 = vrot.slane %v4023_v58, %v4726_v25  ;;  %v447_v55 = vpop.permute.xlu0 %446 }
 0x1ac   :  { %v282_v4 = vrot.slane %v274_v59, %v4744_v32  ;;  %v289_v5 = vrot.slane %v275_v60, %v4744_v32  ;;  %v298_v6 = vrot.slane %v290_v61, %v4744_v32  ;;  %v305_v7 = vrot.slane %v291_v62, %v4744_v32 }
 0x1ad   :  { %v342_v9 = vcombine.low %v317_v63, %v325_v1  ;;  %v358_v10 = vcombine.low %v333_v2, %v341_v3  ;;  %v343_v11 = vcombine.high %v317_v63, %v325_v1  ;;  %v359_v13 = vcombine.high %v333_v2, %v341_v3 }
 0x1ae   :  { %v378_v14 = vcombine.low %v282_v4, %v289_v5  ;;  %v4024_v15 = vcombine.high %v282_v4, %v289_v5  ;;  %v394_v16 = vcombine.low %v298_v6, %v305_v7  ;;  %v4025_v17 = vcombine.high %v298_v6, %v305_v7  ;;  %742 = vrot.lane.b32.xlu1 %v4704_v8, %s4565_s11  ;;  %v1040_v8 = vld [vmem:[#allocation7 + $0x8] sm:$0xf] }
 0x1af   :  { %v350_v18 = vrot.slane %v342_v9, %v4744_v32  ;;  %v366_v19 = vrot.slane %v358_v10, %v4744_v32  ;;  %v357_v20 = vrot.slane %v343_v11, %v4744_v32  ;;  %v373_v21 = vrot.slane %v359_v13, %v4744_v32 }
 0x1b0   :  { %v385_v24 = vrot.slane %v378_v14, %v4726_v25  ;;  %v393_v26 = vrot.slane %v4024_v15, %v4726_v25  ;;  %v401_v27 = vrot.slane %v394_v16, %v4726_v25  ;;  %v409_v30 = vrot.slane %v4025_v17, %v4726_v25 }
 0x1b1   :  { %v4796_v31 = vcombine.low %v350_v18, %v366_v19  ;;  %v4798_v33 = vcombine.high %v350_v18, %v366_v19  ;;  %v4806_v39 = vcombine.low %v357_v20, %v373_v21  ;;  %v4808_v40 = vcombine.high %v357_v20, %v373_v21 }
 0x1b2   :  { %v410_v35 = vcombine.low %v385_v24, %v393_v26  ;;  %v426_v36 = vcombine.low %v401_v27, %v409_v30  ;;  %v411_v41 = vcombine.high %v385_v24, %v393_v26  ;;  %v427_v46 = vcombine.high %v401_v27, %v409_v30 }
 0x1b3   :  { %4179 = vmatmul.mubr.msk.f32.vlgmr.msra.gmra.mrb[4].mxu0 %vm1054_vm2, %v4796_v31  ;;  %4184 = vmatmul.mubr.msk.f32.vlgmr.msra.gmra.mrb[0].mxu1 %vm1054_vm2, %v4798_v33 }
 0x1b4   :  { %4187 = vmatpush3.xpose.msk.msra.mxu1 %vm1054_vm2, %v1040_v8  ;;  %4192 = vmatpush3.xpose.msk.msra.mxu0 %vm1054_vm2, %v1041_v34  ;;  %v418_v44 = vrot.slane %v410_v35, %v4744_v32  ;;  %v434_v45 = vrot.slane %v426_v36, %v4744_v32  ;;  %v425_v47 = vrot.slane %v411_v41, %v4744_v32 }
 0x1b5   :  { %4188 = vmatprep.mubr.msk.f32.mxu1 %vm4573_vm0, %v4572_v0  ;;  %4193 = vmatprep.mubr.msk.f32.mxu0 %vm4573_vm0, %v4572_v0  ;;  %v441_v52 = vrot.slane %v427_v46, %v4744_v32 }
 0x1b6   :  { %4196 = vmatprep.subr.mxu1 %v4572_v0  ;;  %4201 = vmatprep.subr.mxu0 %v4572_v0  ;;  %v4829_v48 = vcombine.low %v418_v44, %v434_v45  ;;  %v4831_v49 = vcombine.high %v418_v44, %v434_v45 }
 0x1b7   :  { %4189 = vmatmul.mubr.msk.f32.vlgmr.msra.gmra.mrb[2].mxu1 %vm1054_vm2, %v4806_v39  ;;  %4194 = vmatmul.mubr.msk.f32.vlgmr.msra.gmra.mrb[6].mxu0 %vm1054_vm2, %v4808_v40  ;;  %v4846_v53 = vcombine.low %v425_v47, %v441_v52  ;;  %v4848_v54 = vcombine.high %v425_v47, %v441_v52 }
 0x1b8   :  { %4197 = vmatpush3.xpose.msk.msra.mxu1 %vm1054_vm2, %v1042_v42  ;;  %4202 = vmatpush3.xpose.msk.msra.mxu0 %vm1054_vm2, %v1043_v43 }
 0x1b9   :  { %4198 = vmatprep.mubr.msk.f32.mxu1 %vm4573_vm0, %v4572_v0  ;;  %4203 = vmatprep.mubr.msk.f32.mxu0 %vm4573_vm0, %v4572_v0 }
 0x1ba   :  { %4206 = vmatprep.subr.mxu1 %v4572_v0  ;;  %4211 = vmatprep.subr.mxu0 %v4572_v0 }
 0x1bb   :  { %4199 = vmatmul.mubr.msk.f32.vlgmr.msra.gmra.mrb[4].mxu1 %vm1054_vm2, %v4829_v48  ;;  %4204 = vmatmul.mubr.msk.f32.vlgmr.msra.gmra.mrb[8].mxu0 %vm1054_vm2, %v4831_v49 }
 0x1bc   :  { %4207 = vmatpush3.xpose.msk.msra.mxu1 %vm1054_vm2, %v1044_v50  ;;  %4212 = vmatpush3.xpose.msk.msra.mxu0 %vm1054_vm2, %v1045_v51 }
 0x1bd   :  { %4208 = vmatprep.mubr.msk.f32.mxu1 %vm4573_vm0, %v4572_v0  ;;  %4213 = vmatprep.mubr.msk.f32.mxu0 %vm4573_vm0, %v4572_v0 }
 0x1be   :  { %4216 = vmatprep.subr.mxu1 %v4572_v0  ;;  %4221 = vmatprep.subr.mxu0 %v4572_v0 }
 0x1bf   :  { %4209 = vmatmul.mubr.msk.f32.vlgmr.msra.gmra.mrb[6].mxu1 %vm1054_vm2, %v4846_v53  ;;  %4214 = vmatmul.mubr.msk.f32.vlgmr.msra.gmra.mrb[10].mxu0 %vm1054_vm2, %v4848_v54 }
 0x1c0   :  { %4218 = vmatprep.mubr.msk.f32.mxu1 %vm4573_vm0, %v4572_v0  ;;  %4223 = vmatprep.mubr.msk.f32.mxu0 %vm4573_vm0, %v4572_v0 }
 0x20f   :  { %v451_v56 = vpop.permute.xlu1 %450 }
 0x213   :  { %v455_v57 = vpop.permute.xlu0 %454  ;;  %v459_v58 = vpop.permute.xlu1 %458 }
 0x214   :  { %v470_v59 = vcombine.low %v447_v55, %v455_v57  ;;  %v471_v60 = vcombine.high %v447_v55, %v455_v57  ;;  %v486_v61 = vcombine.low %v451_v56, %v459_v58  ;;  %v487_v62 = vcombine.high %v451_v56, %v459_v58 }
 0x216   :  { %v478_v63 = vrot.slane %v470_v59, %v4726_v25  ;;  %v485_v1 = vrot.slane %v471_v60, %v4726_v25  ;;  %v494_v2 = vrot.slane %v486_v61, %v4726_v25  ;;  %v501_v3 = vrot.slane %v487_v62, %v4726_v25 }
 0x217   :  { %v449_v4 = vpop.permute.xlu0 %448 }
 0x218   :  { %v502_v5 = vcombine.low %v478_v63, %v494_v2  ;;  %v503_v6 = vcombine.high %v478_v63, %v494_v2  ;;  %v518_v7 = vcombine.low %v485_v1, %v501_v3  ;;  %v519_v9 = vcombine.high %v485_v1, %v501_v3  ;;  %v453_v10 = vpop.permute.xlu1 %452 }
 0x21a   :  { %v510_v11 = vrot.slane %v502_v5, %v4744_v32  ;;  %v517_v13 = vrot.slane %v503_v6, %v4744_v32  ;;  %v526_v14 = vrot.slane %v518_v7, %v4744_v32  ;;  %v533_v15 = vrot.slane %v519_v9, %v4744_v32 }
 0x21b   :  { %v457_v16 = vpop.permute.xlu0 %456 }
 0x21c   :  { %v606_v17 = vcombine.low %v510_v11, %v517_v13  ;;  %v4026_v18 = vcombine.high %v510_v11, %v517_v13  ;;  %v622_v19 = vcombine.low %v526_v14, %v533_v15  ;;  %v4027_v20 = vcombine.high %v526_v14, %v533_v15  ;;  %v461_v21 = vpop.permute.xlu1 %460 }
 0x21d   :  { %v538_v24 = vcombine.low %v449_v4, %v457_v16  ;;  %v539_v26 = vcombine.high %v449_v4, %v457_v16  ;;  %v554_v27 = vcombine.low %v453_v10, %v461_v21  ;;  %v555_v30 = vcombine.high %v453_v10, %v461_v21 }
 0x21e   :  { %v613_v8 = vrot.slane %v606_v17, %v4726_v25  ;;  %v621_v34 = vrot.slane %v4026_v18, %v4726_v25  ;;  %v629_v35 = vrot.slane %v622_v19, %v4726_v25  ;;  %v637_v36 = vrot.slane %v4027_v20, %v4726_v25 }
 0x21f   :  { %v546_v41 = vrot.slane %v538_v24, %v4726_v25  ;;  %v553_v42 = vrot.slane %v539_v26, %v4726_v25  ;;  %v562_v43 = vrot.slane %v554_v27, %v4726_v25  ;;  %v569_v44 = vrot.slane %v555_v30, %v4726_v25 }
 0x220   :  { %v638_v45 = vcombine.low %v613_v8, %v621_v34  ;;  %v639_v46 = vcombine.high %v613_v8, %v621_v34  ;;  %v654_v47 = vcombine.low %v629_v35, %v637_v36  ;;  %v655_v50 = vcombine.high %v629_v35, %v637_v36 }
 0x221   :  { %v570_v51 = vcombine.low %v546_v41, %v562_v43  ;;  %v571_v52 = vcombine.high %v546_v41, %v562_v43  ;;  %v586_v55 = vcombine.low %v553_v42, %v569_v44  ;;  %v587_v56 = vcombine.high %v553_v42, %v569_v44 }
 0x222   :  { %v646_v57 = vrot.slane %v638_v45, %v4744_v32  ;;  %v662_v58 = vrot.slane %v654_v47, %v4744_v32  ;;  %v653_v2 = vrot.slane %v639_v46, %v4744_v32  ;;  %v669_v3 = vrot.slane %v655_v50, %v4744_v32 }
 0x223   :  { %v578_v59 = vrot.slane %v570_v51, %v4744_v32  ;;  %v585_v60 = vrot.slane %v571_v52, %v4744_v32  ;;  %v594_v61 = vrot.slane %v586_v55, %v4744_v32  ;;  %v601_v62 = vrot.slane %v587_v56, %v4744_v32 }
 0x224   :  { %v670_v63 = vcombine.low %v646_v57, %v662_v58  ;;  %v671_v1 = vcombine.high %v646_v57, %v662_v58  ;;  %v672_v14 = vcombine.low %v653_v2, %v669_v3  ;;  %v673_v15 = vcombine.high %v653_v2, %v669_v3 }
 0x225   :  { %v674_v4 = vcombine.low %v578_v59, %v585_v60  ;;  %v4028_v5 = vcombine.high %v578_v59, %v585_v60  ;;  %v690_v6 = vcombine.low %v594_v61, %v601_v62  ;;  %v4029_v7 = vcombine.high %v594_v61, %v601_v62 }
 0x226   :  { %4217 = vmatpush3.xpose.msk.msra.mxu1 %vm1054_vm2, %v670_v63  ;;  %4222 = vmatpush3.xpose.msk.msra.mxu0 %vm1054_vm2, %v671_v1 }
 0x227   :  { %v681_v9 = vrot.slane %v674_v4, %v4726_v25  ;;  %v689_v10 = vrot.slane %v4028_v5, %v4726_v25  ;;  %v697_v11 = vrot.slane %v690_v6, %v4726_v25  ;;  %v705_v13 = vrot.slane %v4029_v7, %v4726_v25  ;;  %4226 = vmatprep.subr.mxu1 %v4572_v0 }
 0x228   :  { %4231 = vmatprep.subr.mxu0 %v4572_v0 }
 0x229   :  { %v706_v16 = vcombine.low %v681_v9, %v689_v10  ;;  %v707_v17 = vcombine.high %v681_v9, %v689_v10  ;;  %v722_v18 = vcombine.low %v697_v11, %v705_v13  ;;  %v723_v19 = vcombine.high %v697_v11, %v705_v13  ;;  %4219 = vmatmul.mubr.msk.f32.vlgmr.msra.gmra.mrb[8].mxu1 %vm1054_vm2, %v4796_v31 }
 0x22a   :  { %4224 = vmatmul.mubr.msk.f32.vlgmr.msra.gmra.mrb[12].mxu0 %vm1054_vm2, %v4798_v33  ;;  %4227 = vmatpush3.xpose.msk.msra.mxu1 %vm1054_vm2, %v672_v14 }
 0x22b   :  { %4232 = vmatpush3.xpose.msk.msra.mxu0 %vm1054_vm2, %v673_v15  ;;  %4228 = vmatprep.mubr.msk.f32.mxu1 %vm4573_vm0, %v4572_v0  ;;  %v714_v20 = vrot.slane %v706_v16, %v4744_v32  ;;  %v730_v21 = vrot.slane %v722_v18, %v4744_v32  ;;  %v721_v31 = vrot.slane %v707_v17, %v4744_v32 }
 0x22c   :  { %4233 = vmatprep.mubr.msk.f32.mxu0 %vm4573_vm0, %v4572_v0  ;;  %4236 = vmatprep.subr.mxu1 %v4572_v0  ;;  %v737_v26 = vrot.slane %v723_v19, %v4744_v32 }
 0x22d   :  { %4229 = vmatmul.mubr.msk.f32.vlgmr.msra.gmra.mrb[10].mxu1 %vm1054_vm2, %v4806_v39  ;;  %4241 = vmatprep.subr.mxu0 %v4572_v0  ;;  %v738_v33 = vcombine.low %v714_v20, %v730_v21  ;;  %v739_v24 = vcombine.high %v714_v20, %v730_v21 }
 0x22e   :  { %4234 = vmatmul.mubr.msk.f32.vlgmr.msra.gmra.mrb[14].mxu0 %vm1054_vm2, %v4808_v40  ;;  %4238 = vmatprep.mubr.msk.f32.mxu1 %vm4573_vm0, %v4572_v0  ;;  %v740_v39 = vcombine.low %v721_v31, %v737_v26  ;;  %v741_v27 = vcombine.high %v721_v31, %v737_v26  ;;  %v5009_v31 = vpop.permute.xlu1 %742 }
 0x22f   :  { %4237 = vmatpush3.xpose.msk.msra.mxu1 %vm1054_vm2, %v738_v33  ;;  %4242 = vmatpush3.xpose.msk.msra.mxu0 %vm1054_vm2, %v739_v24 }
 0x230   :  { %4243 = vmatprep.mubr.msk.f32.mxu0 %vm4573_vm0, %v4572_v0  ;;  %4246 = vmatprep.subr.mxu1 %v4572_v0 }
 0x231   :  { %4251 = vmatprep.subr.mxu0 %v4572_v0 }
 0x232   :  { %4239 = vmatmul.mubr.msk.f32.vlgmr.msra.gmra.mrb[12].mxu1 %vm1054_vm2, %v4829_v48  ;;  %4244 = vmatmul.mubr.msk.f32.vlgmr.msra.gmra.mrb[16].mxu0 %vm1054_vm2, %v4831_v49 }
 0x233   :  { %4247 = vmatpush3.xpose.msk.msra.mxu1 %vm1054_vm2, %v740_v39  ;;  %4252 = vmatpush3.xpose.msk.msra.mxu0 %vm1054_vm2, %v741_v27 }
 0x234   :  { %4248 = vmatprep.mubr.msk.f32.mxu1 %vm4573_vm0, %v4572_v0  ;;  %4253 = vmatprep.mubr.msk.f32.mxu0 %vm4573_vm0, %v4572_v0 }
 0x235   :  { %4256 = vmatprep.subr.mxu1 %v4572_v0  ;;  %4261 = vmatprep.subr.mxu0 %v4572_v0 }
 0x236   :  { %4249 = vmatmul.mubr.msk.f32.vlgmr.msra.gmra.mrb[14].mxu1 %vm1054_vm2, %v4846_v53  ;;  %4254 = vmatmul.mubr.msk.f32.vlgmr.msra.gmra.mrb[18].mxu0 %vm1054_vm2, %v4848_v54 }
 0x237   :  { %4258 = vmatprep.mubr.msk.f32.mxu1 %vm4573_vm0, %v4572_v0  ;;  %4263 = vmatprep.mubr.msk.f32.mxu0 %vm4573_vm0, %v4572_v0 }
 0x286   :  { %v4940_v40 = vpop.f32.mrb[4].mxu0  ;;  %v4942_v48 = vpop.f32.mrb[0].mxu1 }
 0x287   :  { %v4180_v49 = vpop.f32.mrb[5].mxu0  ;;  %v4185_v30 = vpop.f32.mrb[1].mxu1  ;;  %v2251_v8 = vsel %vm2247_vm3, %v4942_v48, -inf  ;;  %v2248_v53 = vsel %vm2247_vm3, %v4940_v40, -inf }
 0x288   :  { %2252 = vmax.xlane.f32.xlu1 %v2251_v8  ;;  %2249 = vmax.xlane.f32.xlu0 %v2248_v53 }
 0x28a   :  { %v4948_v54 = vpop.f32.mrb[2].mxu1  ;;  %v4950_v34 = vpop.f32.mrb[6].mxu0 }
 0x28b   :  { %v4190_v35 = vpop.f32.mrb[3].mxu1  ;;  %v4195_v36 = vpop.f32.mrb[7].mxu0  ;;  %v2254_v41 = vsel %vm2247_vm3, %v4948_v54, -inf  ;;  %v2257_v42 = vsel %vm2247_vm3, %v4950_v34, -inf }
 0x28c   :  { %2255 = vmax.xlane.f32.xlu1 %v2254_v41  ;;  %2258 = vmax.xlane.f32.xlu0 %v2257_v42 }
 0x28e   :  { %v4956_v43 = vpop.f32.mrb[4].mxu1  ;;  %v4958_v44 = vpop.f32.mrb[8].mxu0 }
 0x28f   :  { %v4200_v45 = vpop.f32.mrb[5].mxu1  ;;  %v4205_v46 = vpop.f32.mrb[9].mxu0  ;;  %v2260_v47 = vsel %vm2247_vm3, %v4956_v43, -inf  ;;  %v2263_v50 = vsel %vm2247_vm3, %v4958_v44, -inf }
 0x290   :  { %2261 = vmax.xlane.f32.xlu1 %v2260_v47  ;;  %2264 = vmax.xlane.f32.xlu0 %v2263_v50 }
 0x292   :  { %v4964_v51 = vpop.f32.mrb[6].mxu1  ;;  %v4966_v52 = vpop.f32.mrb[10].mxu0 }
 0x293   :  { %v4210_v55 = vpop.f32.mrb[7].mxu1  ;;  %v4215_v56 = vpop.f32.mrb[11].mxu0  ;;  %v2266_v57 = vsel %vm2247_vm3, %v4964_v51, -inf  ;;  %v2269_v58 = vsel %vm2247_vm3, %v4966_v52, -inf }
 0x294   :  { %2267 = vmax.xlane.f32.xlu1 %v2266_v57  ;;  %2270 = vmax.xlane.f32.xlu0 %v2269_v58 }
 0x2fc   :  { %v1732_v59 = vpop.f32.mrb[8].mxu1 }
 0x2fd   :  { %v4972_v60 = vpop.f32.mrb[12].mxu0  ;;  %v4220_v61 = vpop.f32.mrb[9].mxu1  ;;  %v2272_v62 = vsel %vm1054_vm2, %v1732_v59, -inf }
 0x2fe   :  { %v4225_v63 = vpop.f32.mrb[13].mxu0  ;;  %2273 = vmax.xlane.f32.xlu0 %v2272_v62  ;;  %v2275_v5 = vsel %vm1054_vm2, %v4972_v60, -inf }
 0x300   :  { %v4975_v1 = vpop.f32.mrb[10].mxu1 }
 0x301   :  { %v4977_v2 = vpop.f32.mrb[14].mxu0  ;;  %v4230_v3 = vpop.f32.mrb[11].mxu1  ;;  %v2278_v4 = vsel %vm1054_vm2, %v4975_v1, -inf }
 0x302   :  { %v4235_v6 = vpop.f32.mrb[15].mxu0  ;;  %2279 = vmax.xlane.f32.xlu1 %v2278_v4  ;;  %2276 = vmax.xlane.f32.xlu0 %v2275_v5  ;;  %v2281_v10 = vsel %vm1054_vm2, %v4977_v2, -inf }
 0x305   :  { %v4983_v7 = vpop.f32.mrb[12].mxu1  ;;  %v4985_v9 = vpop.f32.mrb[16].mxu0 }
 0x306   :  { %v4240_v11 = vpop.f32.mrb[13].mxu1  ;;  %v4245_v13 = vpop.f32.mrb[17].mxu0  ;;  %v2284_v14 = vsel %vm1054_vm2, %v4983_v7, -inf  ;;  %2282 = vmax.xlane.f32.xlu0 %v2281_v10  ;;  %v2287_v17 = vsel %vm1054_vm2, %v4985_v9, -inf }
 0x307   :  { %2285 = vmax.xlane.f32.xlu1 %v2284_v14 }
 0x309   :  { %v4991_v15 = vpop.f32.mrb[14].mxu1  ;;  %v4993_v16 = vpop.f32.mrb[18].mxu0 }
 0x30a   :  { %v4250_v18 = vpop.f32.mrb[15].mxu1  ;;  %v4255_v19 = vpop.f32.mrb[19].mxu0  ;;  %v2290_v20 = vsel %vm1054_vm2, %v4991_v15, -inf  ;;  %2288 = vmax.xlane.f32.xlu0 %v2287_v17  ;;  %v2293_v21 = vsel %vm1054_vm2, %v4993_v16, -inf }
 0x30b   :  { %2291 = vmax.xlane.f32.xlu1 %v2290_v20 }
 0x30e   :  { %2294 = vmax.xlane.f32.xlu0 %v2293_v21 }
 0x315   :  { %v2250_v33 = vpop.xlane.xlu0 %2249  ;;  %v2253_v24 = vpop.xlane.xlu1 %2252 }
 0x319   :  { %v2259_v26 = vpop.xlane.xlu0 %2258  ;;  %v2256_v39 = vpop.xlane.xlu1 %2255 }
 0x31c   :  { %750 = vrot.lane.b32.xlu1 %v4732_v28, %s4565_s11 }
 0x31d   :  { %v2265_v27 = vpop.xlane.xlu0 %2264  ;;  %v2262_v49 = vpop.xlane.xlu1 %2261 }
 0x320   :  { %754 = vrot.lane.b32.xlu1 %v4720_v22, %s4565_s11 }
 0x321   :  { %v2271_v30 = vpop.xlane.xlu0 %2270  ;;  %v2268_v8 = vpop.xlane.xlu1 %2267 }
 0x324   :  { %744 = vrot.lane.b32.xlu1 %v4708_v12, %s4565_s11  ;;  %746 = vrot.lane.b32.xlu0 %v4722_v23, %s4565_s11 }
 0x38b   :  { %v2274_v28 = vpop.xlane.xlu0 %2273 }
 0x38c   :  { %v2296_v53 = vmax.f32 %v2250_v33, %v2274_v28 }
 0x38e   :  { %v2304_v22 = vsub.f32 %v4940_v40, %v2296_v53  ;;  %v2328_v35 = vsub.f32 %v1732_v59, %v2296_v53 }
 0x38f   :  { %v2280_v36 = vpop.xlane.xlu1 %2279  ;;  %v2277_v12 = vpop.xlane.xlu0 %2276 }
 0x390   :  { %v2312_v41 = vmul.f32 1.442695, %v2304_v22  ;;  %v2298_v42 = vmax.f32 %v2256_v39, %v2280_v36  ;;  %v2297_v23 = vmax.f32 %v2253_v24, %v2277_v12  ;;  %v2336_v45 = vmul.f32 1.442695, %v2328_v35 }
 0x392   :  { %4398 = vpow2.f32 %v2312_v41  ;;  %v2306_v46 = vsub.f32 %v4948_v54, %v2298_v42  ;;  %v2305_v47 = vsub.f32 %v4942_v48, %v2297_v23  ;;  %v2329_v50 = vsub.f32 %v4972_v60, %v2297_v23 }
 0x393   :  { %v2283_v55 = vpop.xlane.xlu0 %2282  ;;  %v2330_v57 = vsub.f32 %v4975_v1, %v2298_v42  ;;  %4400 = vpow2.f32 %v2336_v45 }
 0x394   :  { %v2316_v56 = vmul.f32 1.442695, %v2306_v46  ;;  %v2314_v58 = vmul.f32 1.442695, %v2305_v47  ;;  %v2286_v40 = vpop.xlane.xlu1 %2285  ;;  %v2299_v59 = vmax.f32 %v2259_v26, %v2283_v55  ;;  %v2338_v61 = vmul.f32 1.442695, %v2329_v50 }
 0x395   :  { %v2300_v62 = vmax.f32 %v2262_v49, %v2286_v40  ;;  %v2340_v4 = vmul.f32 1.442695, %v2330_v57 }
 0x396   :  { %v2307_v63 = vsub.f32 %v4950_v34, %v2299_v59  ;;  %4402 = vpow2.f32 %v2316_v56  ;;  %v2331_v1 = vsub.f32 %v4977_v2, %v2299_v59 }
 0x397   :  { %v2289_v3 = vpop.xlane.xlu0 %2288  ;;  %4404 = vpow2.f32 %v2314_v58  ;;  %v2308_v48 = vsub.f32 %v4956_v43, %v2300_v62  ;;  %v2332_v11 = vsub.f32 %v4983_v7, %v2300_v62 }
 0x398   :  { %v2292_v54 = vpop.xlane.xlu1 %2291  ;;  %4406 = vpow2.f32 %v2338_v61  ;;  %v2318_v60 = vmul.f32 1.442695, %v2307_v63  ;;  %v2301_v5 = vmax.f32 %v2265_v27, %v2289_v3  ;;  %v2342_v17 = vmul.f32 1.442695, %v2331_v1 }
 0x399   :  { %4408 = vpow2.f32 %v2340_v4  ;;  %v2320_v34 = vmul.f32 1.442695, %v2308_v48  ;;  %v2344_v33 = vmul.f32 1.442695, %v2332_v11  ;;  %v2302_v7 = vmax.f32 %v2268_v8, %v2292_v54 }
 0x39a   :  { %4410 = vpow2.f32 %v2318_v60  ;;  %v2309_v14 = vsub.f32 %v4958_v44, %v2301_v5  ;;  %v2333_v24 = vsub.f32 %v4985_v9, %v2301_v5 }
 0x39b   :  { %v2295_v6 = vpop.xlane.xlu0 %2294  ;;  %4412 = vpow2.f32 %v2320_v34  ;;  %v2310_v12 = vsub.f32 %v4964_v51, %v2302_v7  ;;  %v2334_v59 = vsub.f32 %v4991_v15, %v2302_v7 }
 0x39c   :  { %v5019_v10 = vpop.eup %4398  ;;  %v751_v13 = vpop.permute.xlu1 %750  ;;  %v5024_v19 = vmax.f32 %v2271_v30, %v2295_v6  ;;  %v2322_v39 = vmul.f32 1.442695, %v2309_v14  ;;  %4414 = vpow2.f32 %v2342_v17  ;;  %v2346_v41 = vmul.f32 1.442695, %v2333_v24 }
 0x39d   :  { %v766_v18 = vcombine.low %v5009_v31, %v751_v13  ;;  %v5026_v43 = vpop.eup %4400  ;;  %v767_v2 = vcombine.high %v5009_v31, %v751_v13  ;;  %v2352_v20 = vsel %vm2247_vm3, %v5019_v10, 0.0  ;;  %4416 = vpow2.f32 %v2344_v33 }
 0x39e   :  { %2353 = vadd.xlane.f32.xlu1 %v2352_v20  ;;  %v2311_v28 = vsub.f32 %v4966_v52, %v5024_v19  ;;  %v2376_v8 = vsel %vm1054_vm2, %v5026_v43, 0.0  ;;  %4418 = vpow2.f32 %v2322_v39  ;;  %v2324_v4 = vmul.f32 1.442695, %v2310_v12 }
 0x39f   :  { %v747_v21 = vpop.permute.xlu0 %746  ;;  %v774_v31 = vrot.slane %v766_v18, %v4726_v25  ;;  %v781_v53 = vrot.slane %v767_v2, %v4726_v25  ;;  %4420 = vpow2.f32 %v2346_v41  ;;  %v2348_v13 = vmul.f32 1.442695, %v2334_v59 }
 0x3a0   :  { %v755_v26 = vpop.permute.xlu1 %754  ;;  %v5032_v44 = vpop.eup %4402  ;;  %v2326_v47 = vmul.f32 1.442695, %v2311_v28  ;;  %v2335_v2 = vsub.f32 %v4993_v16, %v5024_v19 }
 0x3a1   :  { %v782_v27 = vcombine.low %v747_v21, %v755_v26  ;;  %v783_v49 = vcombine.high %v747_v21, %v755_v26  ;;  %v5034_v30 = vpop.eup %4404  ;;  %v2358_v50 = vsel %vm2247_vm3, %v5032_v44, 0.0 }
 0x3a2   :  { %v5041_v9 = vpop.eup %4406  ;;  %v2355_v36 = vsel %vm2247_vm3, %v5034_v30, 0.0  ;;  %2377 = vadd.xlane.f32.xlu1 %v2376_v8  ;;  %4422 = vpow2.f32 %v2326_v47 }
 0x3a3   :  { %v790_v22 = vrot.slane %v782_v27, %v4726_v25  ;;  %v797_v35 = vrot.slane %v783_v49, %v4726_v25  ;;  %2356 = vadd.xlane.f32.xlu0 %v2355_v36  ;;  %v5049_v46 = vpop.eup %4408  ;;  %v2379_v55 = vsel %vm1054_vm2, %v5041_v9, 0.0  ;;  %4424 = vpow2.f32 %v2324_v4 }
 0x3a4   :  { %v5055_v56 = vpop.eup %4410  ;;  %v2382_v54 = vsel %vm1054_vm2, %v5049_v46, 0.0  ;;  %4426 = vpow2.f32 %v2348_v13 }
 0x3a5   :  { %v798_v52 = vcombine.low %v774_v31, %v790_v22  ;;  %v799_v42 = vcombine.high %v774_v31, %v790_v22  ;;  %v814_v23 = vcombine.low %v781_v53, %v797_v35  ;;  %v815_v45 = vcombine.high %v781_v53, %v797_v35  ;;  %v5066_v60 = vpop.eup %4412 }
 0x3a6   :  { %2359 = vadd.xlane.f32.xlu1 %v2358_v50  ;;  %v2361_v48 = vsel %vm2247_vm3, %v5055_v56, 0.0  ;;  %v5072_v11 = vpop.eup %4414  ;;  %v2364_v20 = vsel %vm2247_vm3, %v5066_v60, 0.0  ;;  %v2350_v31 = vmul.f32 1.442695, %v2335_v2  ;;  %v745_v50 = vpop.permute.xlu1 %744 }
 0x3a7   :  { %v806_v51 = vrot.slane %v798_v52, %v4744_v32  ;;  %v813_v57 = vrot.slane %v799_v42, %v4744_v32  ;;  %v822_v58 = vrot.slane %v814_v23, %v4744_v32  ;;  %v829_v40 = vrot.slane %v815_v45, %v4744_v32  ;;  %2380 = vadd.xlane.f32.xlu0 %v2379_v55  ;;  %v5074_v18 = vpop.eup %4416 }
 0x3a8   :  { %v2385_v33 = vsel %vm1054_vm2, %v5072_v11, 0.0  ;;  %v5087_v39 = vpop.eup %4418  ;;  %v2388_v53 = vsel %vm1054_vm2, %v5074_v18, 0.0  ;;  %4428 = vpow2.f32 %v2350_v31 }
 0x3a9   :  { %v902_v61 = vcombine.low %v806_v51, %v813_v57  ;;  %v4030_v62 = vcombine.high %v806_v51, %v813_v57  ;;  %v918_v63 = vcombine.low %v822_v58, %v829_v40  ;;  %v4031_v3 = vcombine.high %v822_v58, %v829_v40  ;;  %v5092_v49 = vpop.eup %4420 }
 0x3aa   :  { %2383 = vadd.xlane.f32.xlu1 %v2382_v54  ;;  %v2367_v22 = vsel %vm2247_vm3, %v5087_v39, 0.0  ;;  %v2391_v36 = vsel %vm1054_vm2, %v5092_v49, 0.0 }
 0x3ab   :  { %v909_v5 = vrot.slane %v902_v61, %v4726_v25  ;;  %v917_v15 = vrot.slane %v4030_v62, %v4726_v25  ;;  %v925_v1 = vrot.slane %v918_v63, %v4726_v25  ;;  %v933_v6 = vrot.slane %v4031_v3, %v4726_v25  ;;  %2362 = vadd.xlane.f32.xlu0 %v2361_v48 }
 0x3ac   :  { %v5102_v35 = vpop.eup %4422 }
 0x3ad   :  { %v934_v34 = vcombine.low %v909_v5, %v917_v15  ;;  %v950_v14 = vcombine.low %v925_v1, %v933_v6  ;;  %v935_v17 = vcombine.high %v909_v5, %v917_v15  ;;  %v951_v21 = vcombine.high %v925_v1, %v933_v6  ;;  %v5110_v41 = vpop.eup %4424 }
 0x3ae   :  { %2365 = vadd.xlane.f32.xlu1 %v2364_v20  ;;  %v2373_v12 = vsel %vm2247_vm3, %v5102_v35, 0.0  ;;  %v2370_v52 = vsel %vm2247_vm3, %v5110_v41, 0.0  ;;  %v5114_v42 = vpop.eup %4426 }
 0x3af   :  { %v942_v7 = vrot.slane %v934_v34, %v4744_v32  ;;  %v958_v24 = vrot.slane %v950_v14, %v4744_v32  ;;  %v5085_v26 = vrot.slane %v935_v17, %v4744_v32  ;;  %2386 = vadd.xlane.f32.xlu0 %v2385_v33  ;;  %v5090_v16 = vrot.slane %v951_v21, %v4744_v32 }
 0x3b0   :  { %v2394_v23 = vsel %vm1054_vm2, %v5114_v42, 0.0 }
 0x3b1   :  { %v966_v19 = vcombine.low %v942_v7, %v958_v24  ;;  %v967_v27 = vcombine.high %v942_v7, %v958_v24  ;;  %v968_v28 = vcombine.low %v5085_v26, %v5090_v16  ;;  %v969_v8 = vcombine.high %v5085_v26, %v5090_v16 }
 0x3b2   :  { %2389 = vadd.xlane.f32.xlu1 %v2388_v53  ;;  %v5118_v45 = vpop.eup %4428 }
 0x3b3   :  { %4257 = vmatpush3.msra.mxu1 %v966_v19  ;;  %4262 = vmatpush3.msra.mxu0 %v967_v27  ;;  %v2397_v47 = vsel %vm1054_vm2, %v5118_v45, 0.0 }
 0x3b4   :  { %2368 = vadd.xlane.f32.xlu0 %v2367_v22  ;;  %4266 = vmatprep.subr.mxu1 %v4572_v0 }
 0x3b5   :  { %4271 = vmatprep.subr.mxu0 %v4572_v0 }
 0x3b6   :  { %2374 = vadd.xlane.f32.xlu1 %v2373_v12 }
 0x3b8   :  { %2392 = vadd.xlane.f32.xlu0 %v2391_v36 }
 0x3bc   :  { %2371 = vadd.xlane.f32.xlu0 %v2370_v52 }
 0x3c0   :  { %2395 = vadd.xlane.f32.xlu0 %v2394_v23 }
 0x3c4   :  { %2398 = vadd.xlane.f32.xlu0 %v2397_v47 }
 0x3c7   :  { %752 = vrot.lane.b32.xlu1 %v4750_v37, %s4565_s11 }
 0x3cb   :  { %756 = vrot.lane.b32.xlu1 %v4752_v38, %s4565_s11 }
 0x3da   :  { %748 = vrot.lane.b32.xlu0 %v4734_v29, %s4565_s11 }
 0x42b   :  { %v2354_v55 = vpop.xlane.xlu1 %2353 }
 0x42f   :  { %v2378_v51 = vpop.xlane.xlu1 %2377 }
 0x430   :  { %v2357_v57 = vpop.xlane.xlu0 %2356  ;;  %v2400_v58 = vadd.f32 %v2378_v51, %v2354_v55 }
 0x432   :  { %4430 = vrcp.f32 %v2400_v58 }
 0x433   :  { %v2360_v40 = vpop.xlane.xlu1 %2359 }
 0x434   :  { %v2381_v59 = vpop.xlane.xlu0 %2380 }
 0x435   :  { %v2401_v61 = vadd.f32 %v2381_v59, %v2357_v57 }
 0x437   :  { %4432 = vrcp.f32 %v2401_v61  ;;  %v2384_v62 = vpop.xlane.xlu1 %2383 }
 0x438   :  { %v2363_v63 = vpop.xlane.xlu0 %2362  ;;  %v2402_v3 = vadd.f32 %v2384_v62, %v2360_v40 }
 0x43a   :  { %4434 = vrcp.f32 %v2402_v3 }
 0x43b   :  { %v2366_v37 = vpop.xlane.xlu1 %2365 }
 0x43c   :  { %v2387_v4 = vpop.xlane.xlu0 %2386  ;;  %v5128_v38 = vpop.eup %4430 }
 0x43d   :  { %v2403_v54 = vadd.f32 %v2387_v4, %v2363_v63  ;;  %v2424_v29 = vmul.f32 %v5128_v38, %v5026_v43 }
 0x43f   :  { %4436 = vrcp.f32 %v2403_v54  ;;  %4259 = vmatmul.mubr.msk.f32.vlgmr.msra.gmra.mrb[16].mxu1 %vm1054_vm2, %v2424_v29  ;;  %v2390_v15 = vpop.xlane.xlu1 %2389 }
 0x440   :  { %4267 = vmatpush3.msra.mxu1 %v968_v28  ;;  %4268 = vmatprep.mubr.msk.f32.mxu1 %vm4573_vm0, %v4572_v0  ;;  %v2404_v21 = vadd.f32 %v2390_v15, %v2366_v37 }
 0x441   :  { %v2369_v48 = vpop.xlane.xlu0 %2368  ;;  %v5133_v5 = vpop.eup %4432  ;;  %4276 = vmatprep.subr.mxu1 %v4572_v0 }
 0x442   :  { %v2425_v1 = vmul.f32 %v5133_v5, %v5041_v9  ;;  %4438 = vrcp.f32 %v2404_v21 }
 0x443   :  { %v2375_v34 = vpop.xlane.xlu1 %2374 }
 0x444   :  { %4264 = vmatmul.mubr.msk.f32.vlgmr.msra.gmra.mrb[20].mxu0 %vm1054_vm2, %v2425_v1  ;;  %v5141_v43 = vpop.eup %4434 }
 0x445   :  { %v2393_v6 = vpop.xlane.xlu0 %2392  ;;  %4272 = vmatpush3.msra.mxu0 %v969_v8  ;;  %4273 = vmatprep.mubr.msk.f32.mxu0 %vm4573_vm0, %v4572_v0  ;;  %v2426_v13 = vmul.f32 %v5141_v43, %v5049_v46 }
 0x446   :  { %4281 = vmatprep.subr.mxu0 %v4572_v0  ;;  %v2405_v24 = vadd.f32 %v2393_v6, %v2369_v48 }
 0x447   :  { %4269 = vmatmul.mubr.msk.f32.vlgmr.msra.gmra.mrb[18].mxu1 %vm1054_vm2, %v2426_v13  ;;  %v753_v46 = vpop.permute.xlu1 %752 }
 0x448   :  { %4278 = vmatprep.mubr.msk.f32.mxu1 %vm4573_vm0, %v4572_v0  ;;  %v834_v33 = vcombine.low %v745_v50, %v753_v46  ;;  %v835_v7 = vcombine.high %v745_v50, %v753_v46  ;;  %4440 = vrcp.f32 %v2405_v24 }
 0x449   :  { %v2372_v9 = vpop.xlane.xlu0 %2371  ;;  %v5149_v14 = vpop.eup %4436 }
 0x44a   :  { %v2427_v17 = vmul.f32 %v5149_v14, %v5072_v11  ;;  %v842_v11 = vrot.slane %v834_v33, %v4726_v25  ;;  %v849_v28 = vrot.slane %v835_v7, %v4726_v25 }
 0x44b   :  { %v757_v26 = vpop.permute.xlu1 %756 }
 0x44c   :  { %4274 = vmatmul.mubr.msk.f32.vlgmr.msra.gmra.mrb[22].mxu0 %vm1054_vm2, %v2427_v17  ;;  %v5170_v37 = vpop.eup %4438 }
 0x44d   :  { %v2396_v2 = vpop.xlane.xlu0 %2395  ;;  %4283 = vmatprep.mubr.msk.f32.mxu0 %vm4573_vm0, %v4572_v0 }
 0x44e   :  { %v2406_v31 = vadd.f32 %v2396_v2, %v2372_v9 }
 0x450   :  { %4442 = vrcp.f32 %v2406_v31 }
 0x451   :  { %v2399_v20 = vpop.xlane.xlu0 %2398 }
 0x452   :  { %v2407_v22 = vadd.f32 %v2399_v20, %v2375_v34  ;;  %v4441_v15 = vpop.eup %4440  ;;  %v2428_v20 = vmul.f32 %v5170_v37, %v5074_v18 }
 0x453   :  { %v2429_v21 = vmul.f32 %v4441_v15, %v5092_v49  ;;  %v1046_v49 = vld [vmem:[#allocation8] sm:$0xf] }
 0x454   :  { %4444 = vrcp.f32 %v2407_v22 }
 0x455   :  { %v749_v16 = vpop.permute.xlu0 %748 }
 0x456   :  { %v850_v19 = vcombine.low %v749_v16, %v757_v26  ;;  %v851_v27 = vcombine.high %v749_v16, %v757_v26  ;;  %v1047_v26 = vld [vmem:[#allocation8 + $0x4] sm:$0xf]  ;;  %v1048_v16 = vld [vmem:[#allocation8 + $0x8] sm:$0xf] }
 0x458   :  { %v858_v8 = vrot.slane %v850_v19, %v4726_v25  ;;  %v865_v53 = vrot.slane %v851_v27, %v4726_v25  ;;  %v1049_v19 = vld [vmem:[#allocation8 + $0xc] sm:$0xf] }
 0x45a   :  { %v866_v36 = vcombine.low %v842_v11, %v858_v8  ;;  %v867_v12 = vcombine.high %v842_v11, %v858_v8  ;;  %v882_v52 = vcombine.low %v849_v28, %v865_v53  ;;  %v883_v23 = vcombine.high %v849_v28, %v865_v53  ;;  %v5174_v13 = vpop.eup %4442 }
 0x45b   :  { %v2430_v24 = vmul.f32 %v5174_v13, %v5114_v42  ;;  %v2416_v42 = vmul.f32 %v5128_v38, %v5019_v10  ;;  %v2418_v10 = vmul.f32 %v5141_v43, %v5032_v44  ;;  %v1050_v38 = vld [vmem:[#allocation8 + $0x10] sm:$0xf]  ;;  %v2420_v44 = vmul.f32 %v5170_v37, %v5066_v60  ;;  %v1052_v43 = vld [vmem:[#allocation8 + $0x18] sm:$0xf] }
 0x45c   :  { %v874_v47 = vrot.slane %v866_v36, %v4744_v32  ;;  %v881_v50 = vrot.slane %v867_v12, %v4744_v32  ;;  %v890_v55 = vrot.slane %v882_v52, %v4744_v32  ;;  %v897_v51 = vrot.slane %v883_v23, %v4744_v32 }
 0x45d   :  { %v2422_v60 = vmul.f32 %v5174_v13, %v5110_v41 }
 0x45e   :  { %v970_v57 = vcombine.low %v874_v47, %v881_v50  ;;  %v4032_v58 = vcombine.high %v874_v47, %v881_v50  ;;  %v986_v40 = vcombine.low %v890_v55, %v897_v51  ;;  %v4033_v59 = vcombine.high %v890_v55, %v897_v51  ;;  %v5178_v46 = vpop.eup %4444 }
 0x45f   :  { %v2431_v18 = vmul.f32 %v5178_v46, %v5118_v45  ;;  %v2417_v45 = vmul.f32 %v5133_v5, %v5034_v30  ;;  %v2419_v30 = vmul.f32 %v5149_v14, %v5055_v56  ;;  %v1051_v5 = vld [vmem:[#allocation8 + $0x14] sm:$0xf]  ;;  %v2421_v56 = vmul.f32 %v4441_v15, %v5087_v39  ;;  %v1053_v14 = vld [vmem:[#allocation8 + $0x1c] sm:$0xf] }
 0x460   :  { %v977_v61 = vrot.slane %v970_v57, %v4726_v25  ;;  %v985_v62 = vrot.slane %v4032_v58, %v4726_v25  ;;  %v993_v63 = vrot.slane %v986_v40, %v4726_v25  ;;  %v1001_v3 = vrot.slane %v4033_v59, %v4726_v25 }
 0x461   :  { %v2423_v39 = vmul.f32 %v5178_v46, %v5102_v35 }
 0x462   :  { %v1002_v4 = vcombine.low %v977_v61, %v985_v62  ;;  %v1018_v54 = vcombine.low %v993_v63, %v1001_v3  ;;  %v1003_v29 = vcombine.high %v977_v61, %v985_v62  ;;  %v1019_v48 = vcombine.high %v993_v63, %v1001_v3 }
 0x464   :  { %v1010_v1 = vrot.slane %v1002_v4, %v4744_v32  ;;  %v1026_v6 = vrot.slane %v1018_v54, %v4744_v32  ;;  %v1017_v34 = vrot.slane %v1003_v29, %v4744_v32  ;;  %v1033_v9 = vrot.slane %v1019_v48, %v4744_v32 }
 0x466   :  { %v1034_v17 = vcombine.low %v1010_v1, %v1026_v6  ;;  %v1035_v2 = vcombine.high %v1010_v1, %v1026_v6  ;;  %v1036_v33 = vcombine.low %v1017_v34, %v1033_v9  ;;  %v1037_v7 = vcombine.high %v1017_v34, %v1033_v9 }
 0x468   :  { %4277 = vmatpush3.msra.mxu1 %v1034_v17  ;;  %4282 = vmatpush3.msra.mxu0 %v1035_v2 }
 0x469   :  { %4279 = vmatmul.mubr.msk.f32.vlgmr.msra.gmra.mrb[20].mxu1 %vm1054_vm2, %v2428_v20  ;;  %4284 = vmatmul.mubr.msk.f32.vlgmr.msra.gmra.mrb[24].mxu0 %vm1054_vm2, %v2429_v21 }
 0x46a   :  { %4286 = vmatprep.subr.mxu1 %v4572_v0  ;;  %4291 = vmatprep.subr.mxu0 %v4572_v0 }
 0x46b   :  { %4287 = vmatpush3.msra.mxu1 %v1036_v33  ;;  %4292 = vmatpush3.msra.mxu0 %v1037_v7 }
 0x46c   :  { %4288 = vmatprep.mubr.msk.f32.mxu1 %vm4573_vm0, %v4572_v0  ;;  %4293 = vmatprep.mubr.msk.f32.mxu0 %vm4573_vm0, %v4572_v0 }
 0x46d   :  { %4289 = vmatmul.mubr.msk.f32.vlgmr.msra.gmra.mrb[22].mxu1 %vm1054_vm2, %v2430_v24  ;;  %4294 = vmatmul.mubr.msk.f32.vlgmr.msra.gmra.mrb[26].mxu0 %vm1054_vm2, %v2431_v18 }
 0x46e   :  { %4296 = vmatprep.subr.mxu1 %v4572_v0  ;;  %4301 = vmatprep.subr.mxu0 %v4572_v0 }
 0x46f   :  { %4297 = vmatpush3.msk.msra.mxu1 %vm3019_vm4, %v1046_v49  ;;  %4298 = vmatprep.mubr.msk.f32.mxu1 %vm4573_vm0, %v4572_v0 }
 0x470   :  { %4302 = vmatpush3.msk.msra.mxu0 %vm3019_vm4, %v1047_v26  ;;  %4303 = vmatprep.mubr.msk.f32.mxu0 %vm4573_vm0, %v4572_v0 }
 0x471   :  { %4299 = vmatmul.mubr.msk.f32.vlgmr.msra.gmra.mrb[16].mxu1 %vm2247_vm3, %v2416_v42  ;;  %4304 = vmatmul.mubr.msk.f32.vlgmr.msra.gmra.mrb[20].mxu0 %vm2247_vm3, %v2417_v45 }
 0x472   :  { %4306 = vmatprep.subr.mxu1 %v4572_v0  ;;  %4311 = vmatprep.subr.mxu0 %v4572_v0 }
 0x473   :  { %4307 = vmatpush3.msk.msra.mxu1 %vm3019_vm4, %v1048_v16  ;;  %4308 = vmatprep.mubr.msk.f32.mxu1 %vm4573_vm0, %v4572_v0 }
 0x474   :  { %4312 = vmatpush3.msk.msra.mxu0 %vm3019_vm4, %v1049_v19  ;;  %4313 = vmatprep.mubr.msk.f32.mxu0 %vm4573_vm0, %v4572_v0 }
 0x475   :  { %4309 = vmatmul.mubr.msk.f32.vlgmr.msra.gmra.mrb[18].mxu1 %vm2247_vm3, %v2418_v10  ;;  %4314 = vmatmul.mubr.msk.f32.vlgmr.msra.gmra.mrb[22].mxu0 %vm2247_vm3, %v2419_v30 }
 0x476   :  { %4316 = vmatprep.subr.mxu1 %v4572_v0  ;;  %4321 = vmatprep.subr.mxu0 %v4572_v0 }
 0x477   :  { %4317 = vmatpush3.msk.msra.mxu1 %vm3019_vm4, %v1050_v38  ;;  %4318 = vmatprep.mubr.msk.f32.mxu1 %vm4573_vm0, %v4572_v0 }
 0x478   :  { %4322 = vmatpush3.msk.msra.mxu0 %vm3019_vm4, %v1051_v5  ;;  %4323 = vmatprep.mubr.msk.f32.mxu0 %vm4573_vm0, %v4572_v0 }
 0x479   :  { %4319 = vmatmul.mubr.msk.f32.vlgmr.msra.gmra.mrb[20].mxu1 %vm2247_vm3, %v2420_v44  ;;  %4324 = vmatmul.mubr.msk.f32.vlgmr.msra.gmra.mrb[24].mxu0 %vm2247_vm3, %v2421_v56 }
 0x47a   :  { %4326 = vmatprep.subr.mxu1 %v4572_v0  ;;  %4331 = vmatprep.subr.mxu0 %v4572_v0 }
 0x47b   :  { %4327 = vmatpush3.msk.msra.mxu1 %vm3019_vm4, %v1052_v43  ;;  %4328 = vmatprep.mubr.msk.f32.mxu1 %vm4573_vm0, %v4572_v0 }
 0x47c   :  { %4332 = vmatpush3.msk.msra.mxu0 %vm3019_vm4, %v1053_v14  ;;  %4333 = vmatprep.mubr.msk.f32.mxu0 %vm4573_vm0, %v4572_v0 }
 0x47d   :  { %4329 = vmatmul.mubr.msk.f32.vlgmr.msra.gmra.mrb[22].mxu1 %vm2247_vm3, %v2422_v60  ;;  %4334 = vmatmul.mubr.msk.f32.vlgmr.msra.gmra.mrb[26].mxu0 %vm2247_vm3, %v2423_v39 }
 0x47e   :  { %4336 = vmatprep.subr.bf16.mxu1 %v4572_v0  ;;  %4340 = vmatprep.mubr.msk.bf16.mxu1 %vm4573_vm0, %v4572_v0 }
 0x544   :  { %v3089_v27 = vpop.f32.mrb[16].mxu1  ;;  %v3165_v31 = vpop.f32.mrb[20].mxu0 }
 0x545   :  { %v4300_v41 = vpop.f32.mrb[17].mxu1  ;;  %v4305_v11 = vpop.f32.mrb[21].mxu0 }
 0x548   :  { %v3241_v28 = vpop.f32.mrb[18].mxu1  ;;  %v3317_v35 = vpop.f32.mrb[22].mxu0 }
 0x549   :  { %v3625_v8 = vcombine.low %v3089_v27, %v3241_v28  ;;  %v3626_v53 = vcombine.high %v3089_v27, %v3241_v28  ;;  %v3641_v22 = vcombine.low %v3165_v31, %v3317_v35  ;;  %v3642_v36 = vcombine.high %v3165_v31, %v3317_v35  ;;  %v4310_v12 = vpop.f32.mrb[19].mxu1  ;;  %v4315_v52 = vpop.f32.mrb[23].mxu0 }
 0x54b   :  { %v3633_v23 = vrot.slane %v3625_v8, %v4726_v25  ;;  %v3640_v47 = vrot.slane %v3626_v53, %v4726_v25  ;;  %v3649_v50 = vrot.slane %v3641_v22, %v4726_v25  ;;  %v3656_v55 = vrot.slane %v3642_v36, %v4726_v25  ;;  %v4396_v53 = vld [vmem:[%s5323_s5] sm:$0xff]  }
 0x54c   :  { %v3393_v51 = vpop.f32.mrb[20].mxu1  ;;  %v3469_v57 = vpop.f32.mrb[24].mxu0  ;;  %4337 = vmatpush3.bf16.msra.mxu1 %v4396_v53 }
 0x54d   :  { %v3657_v58 = vcombine.low %v3633_v23, %v3649_v50  ;;  %v3658_v40 = vcombine.high %v3633_v23, %v3649_v50  ;;  %v3673_v59 = vcombine.low %v3640_v47, %v3656_v55  ;;  %v3674_v61 = vcombine.high %v3640_v47, %v3656_v55  ;;  %v4320_v62 = vpop.f32.mrb[21].mxu1  ;;  %v4325_v63 = vpop.f32.mrb[25].mxu0  ;;  %4338 = vmatprep.subr.bf16.mxu1 %v4572_v0 }
 0x54f   :  { %v3665_v3 = vrot.slane %v3657_v58, %v4744_v32  ;;  %v3672_v37 = vrot.slane %v3658_v40, %v4744_v32  ;;  %v3681_v4 = vrot.slane %v3673_v59, %v4744_v32  ;;  %v3688_v54 = vrot.slane %v3674_v61, %v4744_v32 }
 0x550   :  { %v3545_v29 = vpop.f32.mrb[22].mxu1  ;;  %v3621_v48 = vpop.f32.mrb[26].mxu0 }
 0x551   :  { %v3761_v15 = vcombine.low %v3665_v3, %v3672_v37  ;;  %v4090_v1 = vcombine.high %v3665_v3, %v3672_v37  ;;  %v3777_v6 = vcombine.low %v3681_v4, %v3688_v54  ;;  %v4091_v13 = vcombine.high %v3681_v4, %v3688_v54  ;;  %v4330_v34 = vpop.f32.mrb[23].mxu1  ;;  %v4335_v9 = vpop.f32.mrb[27].mxu0 }
 0x552   :  { %v3693_v17 = vcombine.low %v3393_v51, %v3545_v29  ;;  %v3694_v2 = vcombine.high %v3393_v51, %v3545_v29  ;;  %v3709_v46 = vcombine.low %v3469_v57, %v3621_v48  ;;  %v3710_v20 = vcombine.high %v3469_v57, %v3621_v48  ;;  %v4397_v51 = vld [vmem:[%s5323_s5 + $0x8] sm:$0xff]   ;;  %s4580_s5 = smov 16  }
 0x553   :  { %v3768_v21 = vrot.slane %v3761_v15, %v4726_v25  ;;  %v3776_v33 = vrot.slane %v4090_v1, %v4726_v25  ;;  %v3784_v7 = vrot.slane %v3777_v6, %v4726_v25  ;;  %v3792_v24 = vrot.slane %v4091_v13, %v4726_v25  ;;  %4339 = vmatpush3.bf16.msra.mxu1 %v4397_v51 }
 0x554   :  { %v3701_v18 = vrot.slane %v3693_v17, %v4726_v25  ;;  %v3708_v49 = vrot.slane %v3694_v2, %v4726_v25  ;;  %v3717_v26 = vrot.slane %v3709_v46, %v4726_v25  ;;  %v3724_v42 = vrot.slane %v3710_v20, %v4726_v25 }
 0x555   :  { %v3794_v45 = vcombine.high %v3768_v21, %v3776_v33  ;;  %v3810_v16 = vcombine.high %v3784_v7, %v3792_v24  ;;  %v3793_v19 = vcombine.low %v3768_v21, %v3776_v33  ;;  %v3809_v10 = vcombine.low %v3784_v7, %v3792_v24 }
 0x556   :  { %v3725_v30 = vcombine.low %v3701_v18, %v3717_v26  ;;  %v3726_v38 = vcombine.high %v3701_v18, %v3717_v26  ;;  %v3741_v5 = vcombine.low %v3708_v49, %v3724_v42  ;;  %v3742_v44 = vcombine.high %v3708_v49, %v3724_v42  ;;  %v4094_v49 = vld [vmem:[%s5324_s6] ss:$0 sm:$0xff] }
 0x557   :  { %v3808_v56 = vrot.slane %v3794_v45, %v4744_v32  ;;  %v3824_v43 = vrot.slane %v3810_v16, %v4744_v32  ;;  %v3801_v14 = vrot.slane %v3793_v19, %v4744_v32  ;;  %v3817_v60 = vrot.slane %v3809_v10, %v4744_v32 }
 0x558   :  { %v3733_v39 = vrot.slane %v3725_v30, %v4744_v32  ;;  %v3740_v27 = vrot.slane %v3726_v38, %v4744_v32  ;;  %v3749_v31 = vrot.slane %v3741_v5, %v4744_v32  ;;  %v3756_v41 = vrot.slane %v3742_v44, %v4744_v32 }
 0x559   :  { %v3827_v11 = vcombine.low %v3808_v56, %v3824_v43  ;;  %v3825_v28 = vcombine.low %v3801_v14, %v3817_v60  ;;  %v3826_v35 = vcombine.high %v3801_v14, %v3817_v60  ;;  %v3828_v8 = vcombine.high %v3808_v56, %v3824_v43 }
 0x55a   :  { %v3829_v22 = vcombine.low %v3733_v39, %v3740_v27  ;;  %v4092_v36 = vcombine.high %v3733_v39, %v3740_v27  ;;  %v3845_v12 = vcombine.low %v3749_v31, %v3756_v41  ;;  %v4093_v52 = vcombine.high %v3749_v31, %v3756_v41 }
 0x55c   :  { %v3836_v23 = vrot.slane %v3829_v22, %v4726_v25  ;;  %v3844_v47 = vrot.slane %v4092_v36, %v4726_v25  ;;  %v3852_v50 = vrot.slane %v3845_v12, %v4726_v25  ;;  %v3860_v55 = vrot.slane %v4093_v52, %v4726_v25 }
 0x55e   :  { %v3862_v57 = vcombine.high %v3836_v23, %v3844_v47  ;;  %v3878_v58 = vcombine.high %v3852_v50, %v3860_v55  ;;  %v3861_v40 = vcombine.low %v3836_v23, %v3844_v47  ;;  %v3877_v59 = vcombine.low %v3852_v50, %v3860_v55 }
 0x560   :  { %v3876_v61 = vrot.slane %v3862_v57, %v4744_v32  ;;  %v3892_v62 = vrot.slane %v3878_v58, %v4744_v32  ;;  %v3869_v63 = vrot.slane %v3861_v40, %v4744_v32  ;;  %v3885_v3 = vrot.slane %v3877_v59, %v4744_v32 }
 0x562   :  { %v3895_v25 = vcombine.low %v3876_v61, %v3892_v62  ;;  %v3894_v37 = vcombine.high %v3869_v63, %v3885_v3  ;;  %v3893_v0 = vcombine.low %v3869_v63, %v3885_v3  ;;  %v3896_v4 = vcombine.high %v3876_v61, %v3892_v62 }
 0x564   :  { %v4384_v54 = vpack.i.bf16 %v3895_v25, %v3827_v11  ;;  %v4379_v29 = vpack.i.bf16 %v3894_v37, %v3826_v35  ;;  %v4389_v48 = vpack.i.bf16 %v3896_v4, %v3828_v8 }
 0x566   :  { %4385 = vrot.lane.b32.xlu1 %v4384_v54, %s4580_s5  ;;  %4380 = vrot.lane.b32.xlu0 %v4379_v29, %s4569_s25 }
 0x56a   :  { %4390 = vrot.lane.b32.xlu0 %v4389_v48, %s4581_s15 }
 0x5d8   :  { %v4386_v15 = vpop.permute.xlu1 %4385  ;;  %v4381_v1 = vpop.permute.xlu0 %4380 }
 0x5d9   :  { %v4383_v6 = vunpack.i.h.bf16 %v4381_v1  ;;  %v4382_v13 = vunpack.i.l.bf16 %v4381_v1  ;;  %v4388_v34 = vunpack.i.h.bf16 %v4386_v15  ;;  %v4387_v9 = vunpack.i.l.bf16 %v4386_v15 }
 0x5db   :  { %v3921_v32 = vsel %vm1054_vm2, %v3825_v28, %v4382_v13  ;;  %v3922_v17 = vsel %vm1054_vm2, %v3893_v0, %v4383_v6 }
 0x5dc   :  { %v4391_v2 = vpop.permute.xlu0 %4390  ;;  %v3924_v21 = vsel %vm3923_vm5, %v3921_v32, %v4387_v9  ;;  %v3925_v33 = vsel %vm3923_vm5, %v3922_v17, %v4388_v34 }
 0x5dd   :  { %v4393_v46 = vunpack.i.h.bf16 %v4391_v2  ;;  %v4392_v20 = vunpack.i.l.bf16 %v4391_v2 }
 0x5df   :  { %v3927_v7 = vsel %vm3926_vm6, %v3924_v21, %v4392_v20  ;;  %v3928_v24 = vsel %vm3926_vm6, %v3925_v33, %v4393_v46 }
 0x5e0   :  { %v3929_v18 = vpack.c.bf16 %v3928_v24, %v3927_v7 }
 0x5e2   :  { %4341 = vmatmul.mubr.msk.bf16.vlgmr.msra.gmra.mrb[24].mxu1 %vm109_vm1, %v3929_v18 }
 0x6b5   :  { %v3990_v26 = vpop.f32.mrb[24].mxu1 }
 0x6b6   :  { %v3991_v42 = vadd.f32 %v4094_v49, %v3990_v26  ;;  %v4342_v45 = vpop.f32.mrb[25].mxu1 }
 0x6b7   :  { %v3993_v16 = vpop.f32.mrb[26].mxu1 }
 0x6b8   :  { %3997 = vst.msk [vmem:[#allocation10] sm:$0xff] %vm109_vm1, %v3991_v42  ;;  %v3994_v19 = vadd.f32 %v4094_v49, %v3993_v16  ;;  %v4343_v10 = vpop.f32.mrb[27].mxu1 }
 0x6ba   :  { %3998 = vst.msk [vmem:[#allocation10 + $0x8] sm:$0xff] %vm109_vm1, %v3994_v19 }
 0x6bb   :  { %4545 = shalt.err (!%p4542_p8)
}
 0x6bc   :  { %s4546_s21 = scalar_lea.hbm %s5325_s7, 256 }
 0x6bd   :  { %p4547_p9 = scmp.ne.s32.totalorder %s5325_s7, %s4546_s21  ;;  %p4550_p10 = scmp.lt.u32.totalorder %s4546_s21, %s5325_s7 }
 0x6bf   :  { %p4552_p11 = pnand %p4550_p10, %p4547_p9 }
 0x6c1   :  { %4555 = shalt.err (!%p4552_p11)
}
 0x6c2   :  { %4010 = dma.vmem_to_hbm [thread:$0]  %s4005_s16, 256, %s5325_s7, [#allocation4], %s4568_s1, %s4568_s1, %s4569_s25  }
 0x6c3   :  { %4562 = dma.done.wait [#allocation4], 256  }
 0x6c4   :  { %4563 = vsyncadd [#allocation4], 4294967040 }
 0x6c5   :  { %4014 = vsyncpa [#allocation3], 1 }
 0x6c6   :  { %4015 = vsyncpa [#allocation6], 1 }
 0x6c7   :  { %4016 = vsyncpa [#allocation9], 1 }
 0x6c8   :  { %4017 = vsyncpa [#allocation4], 1 }

</bundles_post_ra>
